<compile_context>
chip_gen: v7x
topology: tpu7x:2x2x1
jax: 0.10.0
libtpu: 0.0.40
codegen_flags: <defaults>
</compile_context>

<pallas_src>
import numpy as np
import jax
import jax.numpy as jnp
from jax.experimental import pallas as pl
from jax.experimental.pallas import tpu as pltpu


# ----------------------------------------------------------------------------
# Host-side constant matrices: adaptive pooling & bilinear upsampling
# ----------------------------------------------------------------------------
def _adaptive_pool_matrix(out_size, in_size):
    """P[i, r] = 1/len(region_i) if r in region_i else 0 (PyTorch adaptive_avg_pool)."""
    P = np.zeros((out_size, in_size), np.float32)
    for i in range(out_size):
        start = (i * in_size) // out_size
        end = -((-(i + 1) * in_size) // out_size)  # ceil
        P[i, start:end] = 1.0 / (end - start)
    return P


def _bilinear_matrix(out_size, in_size):
    """U[d, s] weights for F.interpolate(mode='bilinear', align_corners=False)."""
    U = np.zeros((out_size, in_size), np.float32)
    for d in range(out_size):
        src = (d + 0.5) * in_size / out_size - 0.5
        src = max(src, 0.0)
        i0 = min(int(np.floor(src)), in_size - 1)
        i1 = min(i0 + 1, in_size - 1)
        frac = src - i0
        U[d, i0] += 1.0 - frac
        U[d, i1] += frac
    return U


def _branch_matrices(H, W, bins, mh, mw):
    mats = []
    for b in bins:
        hp, wp = b * mh, b * mw
        P = np.kron(_adaptive_pool_matrix(hp, H), _adaptive_pool_matrix(wp, W))  # (hp*wp, HW)
        U = np.kron(_bilinear_matrix(H, hp), _bilinear_matrix(W, wp))            # (HW, hp*wp)
        mats.append((P, U, hp, wp))
    return mats


def _round_up(x, m):
    return ((x + m - 1) // m) * m


def _pick_hw_tile(hw, max_tile):
    """Largest multiple of 128 that divides HW and is <= max_tile (or HW itself)."""
    if hw % 128 != 0 or hw <= 128:
        return hw
    t = min(max(128, (max_tile // 128) * 128), hw)
    while hw % t != 0:
        t -= 128
    return t


def _vmem_limit(parts):
    """Scoped-VMEM budget from the actual block bytes + headroom, clamped to [32, 64] MiB."""
    est = int(sum(parts)) + (8 << 20)
    return int(min(max(est, 32 << 20), 64 << 20))


def _const_spec(arr, single_buffer):
    """Grid-invariant constant: constant block index (DMAed once); optionally 1-buffered."""
    nd = arr.ndim
    index_map = lambda n, t, _nd=nd: (0,) * _nd
    if single_buffer:
        return pl.BlockSpec(arr.shape, index_map, pipeline_mode=pl.Buffered(1))
    return pl.BlockSpec(arr.shape, index_map)


def _call_with_fallback(build, args):
    """pl.Buffered(1) is a pure VMEM optimisation; fall back to default double-buffered
    specs if this jax/libtpu version rejects it (real kernel bugs still surface, since the
    fallback re-raises them)."""
    try:
        return build(True)(*args)
    except Exception:
        return build(False)(*args)


# ----------------------------------------------------------------------------
# Kernel 1: "context" — pooled (reduced over HW tiles) -> per-bin convs -> feat, z
# grid = (N, T), dimension_semantics = ("parallel", "arbitrary")
# ----------------------------------------------------------------------------
def _make_context_kernel(n_bins, crp, bb_total, col_offs):
    def kernel(x_ref, pt_ref, w1_ref, b1_ref, wfb_ref, feat_ref, z_ref, pooled_acc):
        f32 = jnp.float32
        bf16 = jnp.bfloat16
        t = pl.program_id(1)

        @pl.when(t == 0)
        def _():
            pooled_acc[...] = jnp.zeros_like(pooled_acc)

        # adaptive average pooling for ALL bins, accumulated over HW tiles (bf16 MXU, f32 acc)
        x = x_ref[0].astype(bf16)                                            # (C, tHW)
        pooled_acc[...] += jnp.dot(x, pt_ref[...], preferred_element_type=f32)

        @pl.when(t == pl.num_programs(1) - 1)
        def _():
            pooled = pooled_acc[...].astype(bf16)                            # (C, BBp)
            # all per-bin 1x1 conv + folded BN + ReLU in one matmul (stacked weights)
            y = jnp.dot(w1_ref[...], pooled, preferred_element_type=f32) + b1_ref[...]
            y = jnp.maximum(y, 0.0)                                          # (R, BBp) f32
            rows, bbp = y.shape

            # 0/1 bin mask generated in-kernel (cancels cross-bin and padding columns);
            # VPU work kept in f32 for portability (v5e has no bf16 VALU).
            r = jax.lax.broadcasted_iota(jnp.int32, (rows, bbp), 0)
            c = jax.lax.broadcasted_iota(jnp.int32, (rows, bbp), 1)
            row_bin = jnp.zeros((rows, bbp), jnp.int32)
            col_bin = jnp.zeros((rows, bbp), jnp.int32)
            for i in range(1, n_bins):
                row_bin += (r >= i * crp).astype(jnp.int32)
                col_bin += (c >= col_offs[i]).astype(jnp.int32)
            mask = (row_bin == col_bin) & (c < bb_total)
            ym = jnp.where(mask, y, 0.0)                                     # (R, BBp)

            # packed per-bin context features (Crp, BBp): bins side by side along lanes.
            # Row-blocks have disjoint column support, so the sum is exact.
            feat = ym[0:crp]
            for j in range(1, n_bins):
                feat = feat + ym[j * crp:(j + 1) * crp]
            feat_ref[0] = feat.astype(feat_ref.dtype)

            # reassociated upsample path:  z = Wf_bins @ y  (small)
            z = jnp.dot(wfb_ref[...], ym.astype(bf16), preferred_element_type=f32)
            z_ref[0] = z.astype(z_ref.dtype)                                 # (Cout, BBp) bf16

    return kernel


# ----------------------------------------------------------------------------
# Kernel 2: "output" — out_t = ReLU(Wf_x @ x_t + z @ U_t + b), fully parallel over (N, T)
# ----------------------------------------------------------------------------
def _output_kernel(x_ref, ut_ref, z_ref, wfx_ref, bf_ref, out_ref):
    f32 = jnp.float32
    x = x_ref[0].astype(jnp.bfloat16)                                        # (C, tHW)
    acc = jnp.dot(wfx_ref[...], x, preferred_element_type=f32)               # (Cout, tHW)
    acc = acc + jnp.dot(z_ref[0], ut_ref[...], preferred_element_type=f32)   # + z @ U_t
    out_ref[0] = jnp.maximum(acc + bf_ref[...], 0.0).astype(out_ref.dtype)


# ----------------------------------------------------------------------------
# Wrapper
# ----------------------------------------------------------------------------
def appm_forward(x_nchw, params, input_size, bins, *,
                 max_hw_tile=2048, out_dtype=jnp.bfloat16):
    N, C, H, W = x_nchw.shape
    h_inp, w_inp = input_size
    mh = max(1, int(H / h_inp + 0.5))     # guard: never 0 (review correctness concern)
    mw = max(1, int(W / w_inp + 0.5))
    HW = H * W
    n_bins = len(bins)
    n_red = params['w1'][0].shape[0]                  # Cr
    crp = _round_up(n_red, 8)                         # sublane-aligned per-bin rows
    R = n_bins * crp
    c_out = params['wf_x'].shape[0]
    bf16 = jnp.bfloat16
    out_item = jnp.dtype(out_dtype).itemsize
    x_item = jnp.dtype(x_nchw.dtype).itemsize

    mats = _branch_matrices(H, W, bins, mh, mw)
    bb_sizes = [hp * wp for (_, _, hp, wp) in mats]
    BB = sum(bb_sizes)
    BBp = _round_up(BB, 128)

    # stacked (channels-major / transposed) pooling & upsample constants
    P_T = np.zeros((HW, BBp), np.float32)             # pooled = x @ P_T
    U_T = np.zeros((BBp, HW), np.float32)             # upsampled = z @ U_T
    offs, off = [], 0
    for (P, U, hp, wp) in mats:
        bb = hp * wp
        P_T[:, off:off + bb] = P.T
        U_T[off:off + bb, :] = U.T
        offs.append(off)
        off += bb

    # packed per-bin conv weights / biases, padded to crp rows per bin (padded rows are
    # zero -> ReLU(0 + 0) = 0, and the matching wfb columns are zero)
    w1_cat = np.zeros((R, C), np.float32)
    b1_cat = np.zeros((R, 1), np.float32)
    wfb = np.zeros((c_out, R), np.float32)
    for i in range(n_bins):
        w1_cat[i * crp:i * crp + n_red] = np.asarray(params['w1'][i])
        b1_cat[i * crp:i * crp + n_red] = np.asarray(params['b1'][i])
        wfb[:, i * crp:i * crp + n_red] = np.asarray(params['wf_bins'][i])

    tHW = _pick_hw_tile(HW, max_hw_tile)
    T = HW // tHW

    # no host-side dtype cast of x: reshape is metadata-only, tiles are cast in-kernel
    x_flat = x_nchw.reshape(N, C, HW)
    pt = jnp.asarray(P_T, bf16)
    ut = jnp.asarray(U_T, bf16)
    w1j = jnp.asarray(w1_cat, bf16)
    b1j = jnp.asarray(b1_cat, jnp.float32)
    wfbj = jnp.asarray(wfb, bf16)
    wfxj = jnp.asarray(params['wf_x'], bf16)
    bfj = jnp.asarray(params['bf'], jnp.float32)

    # ---- call 1: context (pooled reduction over HW tiles, bin convs on the last tile) ----
    def build_context(single_buffer):
        nbuf = 1 if single_buffer else 2
        in_specs = [
            pl.BlockSpec((1, C, tHW), lambda n, t: (n, 0, t)),
            pl.BlockSpec((tHW, BBp), lambda n, t: (t, 0)),
            _const_spec(w1j, single_buffer),
            _const_spec(b1j, single_buffer),
            _const_spec(wfbj, single_buffer),
        ]
        out_specs = (pl.BlockSpec((1, crp, BBp), lambda n, t: (n, 0, 0)),
                     pl.BlockSpec((1, c_out, BBp), lambda n, t: (n, 0, 0)))
        out_shapes = (jax.ShapeDtypeStruct((N, crp, BBp), out_dtype),
                      jax.ShapeDtypeStruct((N, c_out, BBp), bf16))
        vmem = _vmem_limit([
            2 * C * tHW * x_item,                      # x tiles
            2 * tHW * BBp * 2,                         # pt tiles
            nbuf * R * _round_up(C, 128) * 2,          # w1_cat
            nbuf * R * 128 * 4,                        # b1 (lane-padded)
            nbuf * c_out * _round_up(R, 128) * 2,      # wfb
            2 * crp * BBp * out_item,                  # feat
            2 * c_out * BBp * 2,                       # z
            C * BBp * 4,                               # pooled scratch
        ])
        return pl.pallas_call(
            _make_context_kernel(n_bins, crp, BB, offs),
            out_shape=out_shapes,
            grid_spec=pltpu.PrefetchScalarGridSpec(
                num_scalar_prefetch=0, grid=(N, T),
                in_specs=in_specs, out_specs=out_specs,
                scratch_shapes=[pltpu.VMEM((C, BBp), jnp.float32)]),
            compiler_params=pltpu.CompilerParams(
                dimension_semantics=("parallel", "arbitrary"),
                vmem_limit_bytes=vmem),
        )

    feat_t, z_t = _call_with_fallback(build_context, (x_flat, pt, w1j, b1j, wfbj))

    # ---- call 2: output tiles, fully parallel over (N, HW tiles) ----
    def build_output(single_buffer):
        nbuf = 1 if single_buffer else 2
        in_specs = [
            pl.BlockSpec((1, C, tHW), lambda n, t: (n, 0, t)),
            pl.BlockSpec((BBp, tHW), lambda n, t: (0, t)),
            pl.BlockSpec((1, c_out, BBp), lambda n, t: (n, 0, 0)),
            _const_spec(wfxj, single_buffer),
            _const_spec(bfj, single_buffer),
        ]
        out_spec = pl.BlockSpec((1, c_out, tHW), lambda n, t: (n, 0, t))
        vmem = _vmem_limit([
            2 * C * tHW * x_item,                      # x tiles
            2 * BBp * tHW * 2,                         # ut tiles
            2 * c_out * BBp * 2,                       # z
            nbuf * c_out * _round_up(C, 128) * 2,      # wfx
            nbuf * c_out * 128 * 4,                    # bf (lane-padded)
            2 * c_out * tHW * out_item,                # out tiles
        ])
        return pl.pallas_call(
            _output_kernel,
            out_shape=jax.ShapeDtypeStruct((N, c_out, HW), out_dtype),
            grid_spec=pltpu.PrefetchScalarGridSpec(
                num_scalar_prefetch=0, grid=(N, T),
                in_specs=in_specs, out_specs=out_spec),
            compiler_params=pltpu.CompilerParams(
                dimension_semantics=("parallel", "parallel"),
                vmem_limit_bytes=vmem),
        )

    out_t = _call_with_fallback(build_output, (x_flat, ut, z_t, wfxj, bfj))

    out = out_t.reshape(N, c_out, H, W)
    feats = tuple(
        feat_t[:, :n_red, offs[i]:offs[i] + bb_sizes[i]].reshape(N, n_red, hp, wp)
        for i, (_, _, hp, wp) in enumerate(mats))
    return out, feats


# ----------------------------------------------------------------------------
# Pure-JAX reference (per-bin, un-reassociated, un-batched) for correctness.
# Only the constant P/U matrices are bf16-quantized here (the kernel additionally runs its
# activations through bf16 MXU operands, hence the bf16-level comparison tolerance).
# ----------------------------------------------------------------------------
def appm_reference(x_nchw, params, input_size, bins):
    N, C, H, W = x_nchw.shape
    mh = max(1, int(H / input_size[0] + 0.5))
    mw = max(1, int(W / input_size[1] + 0.5))
    xf = x_nchw.reshape(N, C, H * W).astype(jnp.float32)
    q = lambda a: jnp.asarray(a, jnp.bfloat16).astype(jnp.float32)
    mats = _branch_matrices(H, W, bins, mh, mw)

    acc = jnp.einsum('oc,ncm->nom', params['wf_x'], xf)
    feats = []
    for i, (P, U, hp, wp) in enumerate(mats):
        Pq, Uq = q(P), q(U)
        pooled = jnp.einsum('ncm,bm->ncb', xf, Pq)                              # adaptive avg pool
        y = jax.nn.relu(jnp.einsum('dc,ncb->ndb', params['w1'][i], pooled)
                        + params['b1'][i][None])                                # conv1x1+BN+ReLU
        feats.append(y.reshape(N, -1, hp, wp))
        up = jnp.einsum('ndb,mb->ndm', y, Uq)                                   # bilinear upsample
        acc = acc + jnp.einsum('od,ndm->nom', params['wf_bins'][i], up)
    out = jax.nn.relu(acc + params['bf'][None]).reshape(N, -1, H, W)
    return out, tuple(feats)


# ----------------------------------------------------------------------------
# Deterministic parameter init (ConvNormAct == conv1x1(no bias) + BN + ReLU,
# BN running stats folded into the conv, i.e. inference mode). Weight layout: (c_out, c_in).
# ----------------------------------------------------------------------------
def init_params(key, c_in, c_out, bins):
    n_bins = len(bins)
    cr = c_in // n_bins
    eps = 1e-5

    def conv_bn(k, cin, cout):
        kw, kg, kb, km, kv = jax.random.split(k, 5)
        w = jax.random.normal(kw, (cout, cin), jnp.float32) / np.sqrt(cin)
        gamma = 1.0 + 0.1 * jax.random.normal(kg, (cout,), jnp.float32)
        beta = 0.1 * jax.random.normal(kb, (cout,), jnp.float32)
        mean = 0.1 * jax.random.normal(km, (cout,), jnp.float32)
        var = 1.0 + 0.1 * jax.random.uniform(kv, (cout,), jnp.float32)
        scale = gamma / jnp.sqrt(var + eps)
        return w * scale[:, None], (beta - mean * scale)[:, None]   # (cout,cin), (cout,1)

    keys = jax.random.split(key, n_bins + 1)
    w1, b1 = [], []
    for i in range(n_bins):
        wi, bi = conv_bn(keys[i], c_in, cr)
        w1.append(wi); b1.append(bi)

    c_last = c_in + cr * n_bins
    wf, bf = conv_bn(keys[-1], c_last, c_out)
    wf_x = wf[:, :c_in]
    wf_bins = [wf[:, c_in + i * cr: c_in + (i + 1) * cr] for i in range(n_bins)]
    return dict(w1=w1, b1=b1, wf_x=wf_x, wf_bins=wf_bins, bf=bf)


if __name__ == "__main__":
    key = jax.random.PRNGKey(0)
    N, C_in, C_out, H, W = 2, 16, 16, 16, 16
    bins = (1, 2, 3, 6)
    input_size = (H, W)

    kx, kp = jax.random.split(key)
    # quantize x / weights to bf16-representable values so kernel (bf16 MXU operands) and
    # reference (f32) see identical parameters
    q = lambda a: jnp.asarray(a, jnp.bfloat16).astype(jnp.float32)
    x = q(jax.random.normal(kx, (N, C_in, H, W), jnp.float32))      # NCHW, f32 in HBM
    params = jax.tree_util.tree_map(q, init_params(kp, C_in, C_out, bins))

    # max_hw_tile=128 forces T = HW/128 = 2 tiles so the HW-reduction path is exercised
    out, feats = appm_forward(x, params, input_size, bins, max_hw_tile=128)
    jax.block_until_ready(out)

    ref_out, ref_feats = appm_reference(x, params, input_size, bins)
    out_f = np.asarray(out.astype(jnp.float32))
    assert np.allclose(out_f, np.asarray(ref_out), atol=3e-2, rtol=3e-2)
    for a, b in zip(feats, ref_feats):
        assert np.allclose(np.asarray(a.astype(jnp.float32)), np.asarray(b),
                           atol=3e-2, rtol=3e-2)

    print("KERNEL_OK")
</pallas_src>

<mosaic_0001>
module attributes {stable_mosaic.version = 11 : i64} {
  func.func @kernel(%arg0: i32, %arg1: i32, %arg2: memref<1x16x128xf32, #tpu.memory_space<vmem>>, %arg3: memref<128x128xbf16, #tpu.memory_space<vmem>>, %arg4: memref<32x16xbf16, #tpu.memory_space<vmem>>, %arg5: memref<32x1xf32, #tpu.memory_space<vmem>>, %arg6: memref<16x32xbf16, #tpu.memory_space<vmem>>, %arg7: memref<1x8x128xbf16, #tpu.memory_space<vmem>>, %arg8: memref<1x16x128xbf16, #tpu.memory_space<vmem>>, %arg9: memref<16x128xf32, #tpu.memory_space<vmem>>) attributes {dimension_semantics = [#tpu.dimension_semantics<parallel>, #tpu.dimension_semantics<arbitrary>], iteration_bounds = array<i64: 2, 2>, scalar_prefetch = 0 : i64, scratch_operands = 1 : i64, tpu.core_type = #tpu.core_type<tc>, window_params = [{transform_indices = @transform_0, window_bounds = array<i64: 1, 16, 128>}, {transform_indices = @transform_1, window_bounds = array<i64: 128, 128>}, {pipeline_mode = #tpu.pipeline_mode<synchronous>, transform_indices = @transform_2, window_bounds = array<i64: 32, 16>}, {pipeline_mode = #tpu.pipeline_mode<synchronous>, transform_indices = @transform_3, window_bounds = array<i64: 32, 1>}, {pipeline_mode = #tpu.pipeline_mode<synchronous>, transform_indices = @transform_4, window_bounds = array<i64: 16, 32>}, {transform_indices = @transform_5, window_bounds = array<i64: 1, 8, 128>}, {transform_indices = @transform_6, window_bounds = array<i64: 1, 16, 128>}]} {
    %c0_i32 = arith.constant 0 : i32
    %0 = arith.cmpi eq, %arg1, %c0_i32 : i32
    %1 = arith.extui %0 : i1 to i32
    %c0_i32_0 = arith.constant 0 : i32
    %2 = arith.cmpi ne, %1, %c0_i32_0 : i32
    scf.if %2 {
      %cst_10 = arith.constant 0.000000e+00 : f32
      %14 = vector.broadcast %cst_10 : f32 to vector<16x128xf32>
      %c0_11 = arith.constant 0 : index
      %c0_12 = arith.constant 0 : index
      %15 = vector.load %arg9[%c0_11, %c0_12] : memref<16x128xf32, #tpu.memory_space<vmem>>, vector<16x128xf32>
      tpu.vector_store %arg9[%c0_11, %c0_12], %14 {strides = array<i32>} : memref<16x128xf32, #tpu.memory_space<vmem>>, vector<16x128xf32>,
    } else {
    }
    %c0 = arith.constant 0 : index
    %c0_1 = arith.constant 0 : index
    %c0_2 = arith.constant 0 : index
    %3 = vector.load %arg2[%c0, %c0_1, %c0_2] : memref<1x16x128xf32, #tpu.memory_space<vmem>>, vector<1x16x128xf32>
    %4 = vector.shape_cast %3 : vector<1x16x128xf32> to vector<16x128xf32>
    %5 = arith.truncf %4 : vector<16x128xf32> to vector<16x128xbf16>
    %c0_3 = arith.constant 0 : index
    %c0_4 = arith.constant 0 : index
    %6 = vector.load %arg9[%c0_3, %c0_4] : memref<16x128xf32, #tpu.memory_space<vmem>>, vector<16x128xf32>
    %c0_5 = arith.constant 0 : index
    %c0_6 = arith.constant 0 : index
    %7 = vector.load %arg3[%c0_5, %c0_6] : memref<128x128xbf16, #tpu.memory_space<vmem>>, vector<128x128xbf16>
    %cst = arith.constant dense<0.000000e+00> : vector<16x128xf32>
    %8 = tpu.matmul %5, %7, %cst {dimension_numbers = #tpu.dot_dimension_numbers<[1], [0], [0], [1], [0, 0, 1, 1], [], []>} : vector<16x128xbf16>, vector<128x128xbf16>, vector<16x128xf32> -> vector<16x128xf32>
    %9 = arith.addf %6, %8 : vector<16x128xf32>
    %c0_7 = arith.constant 0 : index
    %c0_8 = arith.constant 0 : index
    %10 = vector.load %arg9[%c0_7, %c0_8] : memref<16x128xf32, #tpu.memory_space<vmem>>, vector<16x128xf32>
    tpu.vector_store %arg9[%c0_7, %c0_8], %9 {strides = array<i32>} : memref<16x128xf32, #tpu.memory_space<vmem>>, vector<16x128xf32>,
    %c1_i32 = arith.constant 1 : i32
    %11 = arith.cmpi eq, %arg1, %c1_i32 : i32
    %12 = arith.extui %11 : i1 to i32
    %c0_i32_9 = arith.constant 0 : i32
    %13 = arith.cmpi ne, %12, %c0_i32_9 : i32
    scf.if %13 {
      %c0_10 = arith.constant 0 : index
      %c0_11 = arith.constant 0 : index
      %14 = vector.load %arg9[%c0_10, %c0_11] : memref<16x128xf32, #tpu.memory_space<vmem>>, vector<16x128xf32>
      %15 = arith.truncf %14 : vector<16x128xf32> to vector<16x128xbf16>
      %c0_12 = arith.constant 0 : index
      %c0_13 = arith.constant 0 : index
      %16 = vector.load %arg4[%c0_12, %c0_13] : memref<32x16xbf16, #tpu.memory_space<vmem>>, vector<32x16xbf16>
      %cst_14 = arith.constant dense<0.000000e+00> : vector<32x128xf32>
      %17 = tpu.matmul %16, %15, %cst_14 {dimension_numbers = #tpu.dot_dimension_numbers<[1], [0], [0], [1], [0, 0, 1, 1], [], []>} : vector<32x16xbf16>, vector<16x128xbf16>, vector<32x128xf32> -> vector<32x128xf32>
      %c0_15 = arith.constant 0 : index
      %c0_16 = arith.constant 0 : index
      %18 = vector.load %arg5[%c0_15, %c0_16] : memref<32x1xf32, #tpu.memory_space<vmem>>, vector<32x1xf32>
      %19 = vector.broadcast %18 : vector<32x1xf32> to vector<32x128xf32>
      %20 = arith.addf %17, %19 : vector<32x128xf32>
      %cst_17 = arith.constant 0.000000e+00 : f32
      %21 = vector.broadcast %cst_17 : f32 to vector<32x128xf32>
      %22 = arith.maximumf %20, %21 : vector<32x128xf32>
      %23 = tpu.iota {dimensions = array<i32: 0>} : vector<32x128xi32>
      %24 = tpu.iota {dimensions = array<i32: 1>} : vector<32x128xi32>
      %c0_i32_18 = arith.constant 0 : i32
      %25 = vector.broadcast %c0_i32_18 : i32 to vector<32x128xi32>
      %c0_i32_19 = arith.constant 0 : i32
      %26 = vector.broadcast %c0_i32_19 : i32 to vector<32x128xi32>
      %c8_i32 = arith.constant 8 : i32
      %27 = vector.broadcast %c8_i32 : i32 to vector<32x128xi32>
      %28 = arith.cmpi sge, %23, %27 : vector<32x128xi32>
      %29 = arith.extui %28 : vector<32x128xi1> to vector<32x128xi32>
      %30 = arith.addi %25, %29 : vector<32x128xi32>
      %c1_i32_20 = arith.constant 1 : i32
      %31 = vector.broadcast %c1_i32_20 : i32 to vector<32x128xi32>
      %32 = arith.cmpi sge, %24, %31 : vector<32x128xi32>
      %33 = arith.extui %32 : vector<32x128xi1> to vector<32x128xi32>
      %34 = arith.addi %26, %33 : vector<32x128xi32>
      %c16_i32 = arith.constant 16 : i32
      %35 = vector.broadcast %c16_i32 : i32 to vector<32x128xi32>
      %36 = arith.cmpi sge, %23, %35 : vector<32x128xi32>
      %37 = arith.extui %36 : vector<32x128xi1> to vector<32x128xi32>
      %38 = arith.addi %30, %37 : vector<32x128xi32>
      %c5_i32 = arith.constant 5 : i32
      %39 = vector.broadcast %c5_i32 : i32 to vector<32x128xi32>
      %40 = arith.cmpi sge, %24, %39 : vector<32x128xi32>
      %41 = arith.extui %40 : vector<32x128xi1> to vector<32x128xi32>
      %42 = arith.addi %34, %41 : vector<32x128xi32>
      %c24_i32 = arith.constant 24 : i32
      %43 = vector.broadcast %c24_i32 : i32 to vector<32x128xi32>
      %44 = arith.cmpi sge, %23, %43 : vector<32x128xi32>
      %45 = arith.extui %44 : vector<32x128xi1> to vector<32x128xi32>
      %46 = arith.addi %38, %45 : vector<32x128xi32>
      %c14_i32 = arith.constant 14 : i32
      %47 = vector.broadcast %c14_i32 : i32 to vector<32x128xi32>
      %48 = arith.cmpi sge, %24, %47 : vector<32x128xi32>
      %49 = arith.extui %48 : vector<32x128xi1> to vector<32x128xi32>
      %50 = arith.addi %42, %49 : vector<32x128xi32>
      %51 = arith.cmpi eq, %46, %50 : vector<32x128xi32>
      %c50_i32 = arith.constant 50 : i32
      %52 = vector.broadcast %c50_i32 : i32 to vector<32x128xi32>
      %53 = arith.cmpi slt, %24, %52 : vector<32x128xi32>
      %54 = arith.andi %51, %53 : vector<32x128xi1>
      %cst_21 = arith.constant 0.000000e+00 : f32
      %55 = vector.broadcast %cst_21 : f32 to vector<32x128xf32>
      %56 = arith.select %54, %22, %55 : vector<32x128xi1>, vector<32x128xf32>
      %57 = vector.extract_strided_slice %56 {offsets = [0, 0], sizes = [8, 128], strides = [1, 1]} : vector<32x128xf32> to vector<8x128xf32>
      %58 = vector.extract_strided_slice %56 {offsets = [8, 0], sizes = [8, 128], strides = [1, 1]} : vector<32x128xf32> to vector<8x128xf32>
      %59 = arith.addf %57, %58 : vector<8x128xf32>
      %60 = vector.extract_strided_slice %56 {offsets = [16, 0], sizes = [8, 128], strides = [1, 1]} : vector<32x128xf32> to vector<8x128xf32>
      %61 = arith.addf %59, %60 : vector<8x128xf32>
      %62 = vector.extract_strided_slice %56 {offsets = [24, 0], sizes = [8, 128], strides = [1, 1]} : vector<32x128xf32> to vector<8x128xf32>
      %63 = arith.addf %61, %62 : vector<8x128xf32>
      %64 = arith.truncf %63 : vector<8x128xf32> to vector<8x128xbf16>
      %c0_22 = arith.constant 0 : index
      %c0_23 = arith.constant 0 : index
      %c0_24 = arith.constant 0 : index
      %65 = vector.load %arg7[%c0_22, %c0_23, %c0_24] : memref<1x8x128xbf16, #tpu.memory_space<vmem>>, vector<1x8x128xbf16>
      %66 = vector.shape_cast %65 : vector<1x8x128xbf16> to vector<8x128xbf16>
      %67 = vector.shape_cast %64 : vector<8x128xbf16> to vector<1x8x128xbf16>
      tpu.vector_store %arg7[%c0_22, %c0_23, %c0_24], %67 {strides = array<i32>} : memref<1x8x128xbf16, #tpu.memory_space<vmem>>, vector<1x8x128xbf16>,
      %c0_25 = arith.constant 0 : index
      %c0_26 = arith.constant 0 : index
      %68 = vector.load %arg6[%c0_25, %c0_26] : memref<16x32xbf16, #tpu.memory_space<vmem>>, vector<16x32xbf16>
      %69 = arith.truncf %56 : vector<32x128xf32> to vector<32x128xbf16>
      %cst_27 = arith.constant dense<0.000000e+00> : vector<16x128xf32>
      %70 = tpu.matmul %68, %69, %cst_27 {dimension_numbers = #tpu.dot_dimension_numbers<[1], [0], [0], [1], [0, 0, 1, 1], [], []>} : vector<16x32xbf16>, vector<32x128xbf16>, vector<16x128xf32> -> vector<16x128xf32>
      %71 = arith.truncf %70 : vector<16x128xf32> to vector<16x128xbf16>
      %c0_28 = arith.constant 0 : index
      %c0_29 = arith.constant 0 : index
      %c0_30 = arith.constant 0 : index
      %72 = vector.load %arg8[%c0_28, %c0_29, %c0_30] : memref<1x16x128xbf16, #tpu.memory_space<vmem>>, vector<1x16x128xbf16>
      %73 = vector.shape_cast %72 : vector<1x16x128xbf16> to vector<16x128xbf16>
      %74 = vector.shape_cast %71 : vector<16x128xbf16> to vector<1x16x128xbf16>
      tpu.vector_store %arg8[%c0_28, %c0_29, %c0_30], %74 {strides = array<i32>} : memref<1x16x128xbf16, #tpu.memory_space<vmem>>, vector<1x16x128xbf16>,
    } else {
    }
    return
  }
  func.func @transform_0(%arg0: i32, %arg1: i32) -> (i32, i32, i32) {
    %c0_i32 = arith.constant 0 : i32
    %c0_i32_0 = arith.constant 0 : i32
    return %arg0, %c0_i32, %arg1 : i32, i32, i32
  }
  func.func @transform_1(%arg0: i32, %arg1: i32) -> (i32, i32) {
    %c0_i32 = arith.constant 0 : i32
    %c0_i32_0 = arith.constant 0 : i32
    return %arg1, %c0_i32 : i32, i32
  }
  func.func @transform_2(%arg0: i32, %arg1: i32) -> (i32, i32) {
    %c0_i32 = arith.constant 0 : i32
    %c0_i32_0 = arith.constant 0 : i32
    %c0_i32_1 = arith.constant 0 : i32
    return %c0_i32, %c0_i32_0 : i32, i32
  }
  func.func @transform_3(%arg0: i32, %arg1: i32) -> (i32, i32) {
    %c0_i32 = arith.constant 0 : i32
    %c0_i32_0 = arith.constant 0 : i32
    %c0_i32_1 = arith.constant 0 : i32
    return %c0_i32, %c0_i32_0 : i32, i32
  }
  func.func @transform_4(%arg0: i32, %arg1: i32) -> (i32, i32) {
    %c0_i32 = arith.constant 0 : i32
    %c0_i32_0 = arith.constant 0 : i32
    %c0_i32_1 = arith.constant 0 : i32
    return %c0_i32, %c0_i32_0 : i32, i32
  }
  func.func @transform_5(%arg0: i32, %arg1: i32) -> (i32, i32, i32) {
    %c0_i32 = arith.constant 0 : i32
    %c0_i32_0 = arith.constant 0 : i32
    %c0_i32_1 = arith.constant 0 : i32
    return %arg0, %c0_i32, %c0_i32_0 : i32, i32, i32
  }
  func.func @transform_6(%arg0: i32, %arg1: i32) -> (i32, i32, i32) {
    %c0_i32 = arith.constant 0 : i32
    %c0_i32_0 = arith.constant 0 : i32
    %c0_i32_1 = arith.constant 0 : i32
    return %arg0, %c0_i32, %c0_i32_0 : i32, i32, i32
  }
}

module attributes {stable_mosaic.version = 11 : i64} {
  func.func @kernel(%arg0: i32, %arg1: i32, %arg2: memref<1x16x128xf32, #tpu.memory_space<vmem>>, %arg3: memref<128x128xbf16, #tpu.memory_space<vmem>>, %arg4: memref<32x16xbf16, #tpu.memory_space<vmem>>, %arg5: memref<32x1xf32, #tpu.memory_space<vmem>>, %arg6: memref<16x32xbf16, #tpu.memory_space<vmem>>, %arg7: memref<1x8x128xbf16, #tpu.memory_space<vmem>>, %arg8: memref<1x16x128xbf16, #tpu.memory_space<vmem>>, %arg9: memref<16x128xf32, #tpu.memory_space<vmem>>) attributes {dimension_semantics = [#tpu.dimension_semantics<parallel>, #tpu.dimension_semantics<arbitrary>], iteration_bounds = array<i64: 2, 2>, scalar_prefetch = 0 : i64, scratch_operands = 1 : i64, tpu.core_type = #tpu.core_type<tc>, window_params = [{transform_indices = @transform_0, window_bounds = array<i64: 1, 16, 128>}, {transform_indices = @transform_1, window_bounds = array<i64: 128, 128>}, {pipeline_mode = #tpu.pipeline_mode<synchronous>, transform_indices = @transform_2, window_bounds = array<i64: 32, 16>}, {pipeline_mode = #tpu.pipeline_mode<synchronous>, transform_indices = @transform_3, window_bounds = array<i64: 32, 1>}, {pipeline_mode = #tpu.pipeline_mode<synchronous>, transform_indices = @transform_4, window_bounds = array<i64: 16, 32>}, {transform_indices = @transform_5, window_bounds = array<i64: 1, 8, 128>}, {transform_indices = @transform_6, window_bounds = array<i64: 1, 16, 128>}]} {
    %c0_i32 = arith.constant 0 : i32
    %0 = arith.cmpi eq, %arg1, %c0_i32 : i32
    %1 = arith.extui %0 : i1 to i32
    %c0_i32_0 = arith.constant 0 : i32
    %2 = arith.cmpi ne, %1, %c0_i32_0 : i32
    scf.if %2 {
      %cst_10 = arith.constant 0.000000e+00 : f32
      %14 = vector.broadcast %cst_10 : f32 to vector<16x128xf32>
      %c0_11 = arith.constant 0 : index
      %c0_12 = arith.constant 0 : index
      %15 = vector.load %arg9[%c0_11, %c0_12] : memref<16x128xf32, #tpu.memory_space<vmem>>, vector<16x128xf32>
      tpu.vector_store %arg9[%c0_11, %c0_12], %14 {strides = array<i32>} : memref<16x128xf32, #tpu.memory_space<vmem>>, vector<16x128xf32>,
    } else {
    }
    %c0 = arith.constant 0 : index
    %c0_1 = arith.constant 0 : index
    %c0_2 = arith.constant 0 : index
    %3 = vector.load %arg2[%c0, %c0_1, %c0_2] : memref<1x16x128xf32, #tpu.memory_space<vmem>>, vector<1x16x128xf32>
    %4 = vector.shape_cast %3 : vector<1x16x128xf32> to vector<16x128xf32>
    %5 = arith.truncf %4 : vector<16x128xf32> to vector<16x128xbf16>
    %c0_3 = arith.constant 0 : index
    %c0_4 = arith.constant 0 : index
    %6 = vector.load %arg9[%c0_3, %c0_4] : memref<16x128xf32, #tpu.memory_space<vmem>>, vector<16x128xf32>
    %c0_5 = arith.constant 0 : index
    %c0_6 = arith.constant 0 : index
    %7 = vector.load %arg3[%c0_5, %c0_6] : memref<128x128xbf16, #tpu.memory_space<vmem>>, vector<128x128xbf16>
    %cst = arith.constant dense<0.000000e+00> : vector<16x128xf32>
    %8 = tpu.matmul %5, %7, %cst {dimension_numbers = #tpu.dot_dimension_numbers<[1], [0], [0], [1], [0, 0, 1, 1], [], []>} : vector<16x128xbf16>, vector<128x128xbf16>, vector<16x128xf32> -> vector<16x128xf32>
    %9 = arith.addf %6, %8 : vector<16x128xf32>
    %c0_7 = arith.constant 0 : index
    %c0_8 = arith.constant 0 : index
    %10 = vector.load %arg9[%c0_7, %c0_8] : memref<16x128xf32, #tpu.memory_space<vmem>>, vector<16x128xf32>
    tpu.vector_store %arg9[%c0_7, %c0_8], %9 {strides = array<i32>} : memref<16x128xf32, #tpu.memory_space<vmem>>, vector<16x128xf32>,
    %c1_i32 = arith.constant 1 : i32
    %11 = arith.cmpi eq, %arg1, %c1_i32 : i32
    %12 = arith.extui %11 : i1 to i32
    %c0_i32_9 = arith.constant 0 : i32
    %13 = arith.cmpi ne, %12, %c0_i32_9 : i32
    scf.if %13 {
      %c0_10 = arith.constant 0 : index
      %c0_11 = arith.constant 0 : index
      %14 = vector.load %arg9[%c0_10, %c0_11] : memref<16x128xf32, #tpu.memory_space<vmem>>, vector<16x128xf32>
      %15 = arith.truncf %14 : vector<16x128xf32> to vector<16x128xbf16>
      %c0_12 = arith.constant 0 : index
      %c0_13 = arith.constant 0 : index
      %16 = vector.load %arg4[%c0_12, %c0_13] : memref<32x16xbf16, #tpu.memory_space<vmem>>, vector<32x16xbf16>
      %cst_14 = arith.constant dense<0.000000e+00> : vector<32x128xf32>
      %17 = tpu.matmul %16, %15, %cst_14 {dimension_numbers = #tpu.dot_dimension_numbers<[1], [0], [0], [1], [0, 0, 1, 1], [], []>} : vector<32x16xbf16>, vector<16x128xbf16>, vector<32x128xf32> -> vector<32x128xf32>
      %c0_15 = arith.constant 0 : index
      %c0_16 = arith.constant 0 : index
      %18 = vector.load %arg5[%c0_15, %c0_16] : memref<32x1xf32, #tpu.memory_space<vmem>>, vector<32x1xf32>
      %19 = vector.broadcast %18 : vector<32x1xf32> to vector<32x128xf32>
      %20 = arith.addf %17, %19 : vector<32x128xf32>
      %cst_17 = arith.constant 0.000000e+00 : f32
      %21 = vector.broadcast %cst_17 : f32 to vector<32x128xf32>
      %22 = arith.maximumf %20, %21 : vector<32x128xf32>
      %23 = tpu.iota {dimensions = array<i32: 0>} : vector<32x128xi32>
      %24 = tpu.iota {dimensions = array<i32: 1>} : vector<32x128xi32>
      %c0_i32_18 = arith.constant 0 : i32
      %25 = vector.broadcast %c0_i32_18 : i32 to vector<32x128xi32>
      %c0_i32_19 = arith.constant 0 : i32
      %26 = vector.broadcast %c0_i32_19 : i32 to vector<32x128xi32>
      %c8_i32 = arith.constant 8 : i32
      %27 = vector.broadcast %c8_i32 : i32 to vector<32x128xi32>
      %28 = arith.cmpi sge, %23, %27 : vector<32x128xi32>
      %29 = arith.extui %28 : vector<32x128xi1> to vector<32x128xi32>
      %30 = arith.addi %25, %29 : vector<32x128xi32>
      %c1_i32_20 = arith.constant 1 : i32
      %31 = vector.broadcast %c1_i32_20 : i32 to vector<32x128xi32>
      %32 = arith.cmpi sge, %24, %31 : vector<32x128xi32>
      %33 = arith.extui %32 : vector<32x128xi1> to vector<32x128xi32>
      %34 = arith.addi %26, %33 : vector<32x128xi32>
      %c16_i32 = arith.constant 16 : i32
      %35 = vector.broadcast %c16_i32 : i32 to vector<32x128xi32>
      %36 = arith.cmpi sge, %23, %35 : vector<32x128xi32>
      %37 = arith.extui %36 : vector<32x128xi1> to vector<32x128xi32>
      %38 = arith.addi %30, %37 : vector<32x128xi32>
      %c5_i32 = arith.constant 5 : i32
      %39 = vector.broadcast %c5_i32 : i32 to vector<32x128xi32>
      %40 = arith.cmpi sge, %24, %39 : vector<32x128xi32>
      %41 = arith.extui %40 : vector<32x128xi1> to vector<32x128xi32>
      %42 = arith.addi %34, %41 : vector<32x128xi32>
      %c24_i32 = arith.constant 24 : i32
      %43 = vector.broadcast %c24_i32 : i32 to vector<32x128xi32>
      %44 = arith.cmpi sge, %23, %43 : vector<32x128xi32>
      %45 = arith.extui %44 : vector<32x128xi1> to vector<32x128xi32>
      %46 = arith.addi %38, %45 : vector<32x128xi32>
      %c14_i32 = arith.constant 14 : i32
      %47 = vector.broadcast %c14_i32 : i32 to vector<32x128xi32>
      %48 = arith.cmpi sge, %24, %47 : vector<32x128xi32>
      %49 = arith.extui %48 : vector<32x128xi1> to vector<32x128xi32>
      %50 = arith.addi %42, %49 : vector<32x128xi32>
      %51 = arith.cmpi eq, %46, %50 : vector<32x128xi32>
      %c50_i32 = arith.constant 50 : i32
      %52 = vector.broadcast %c50_i32 : i32 to vector<32x128xi32>
      %53 = arith.cmpi slt, %24, %52 : vector<32x128xi32>
      %54 = arith.andi %51, %53 : vector<32x128xi1>
      %cst_21 = arith.constant 0.000000e+00 : f32
      %55 = vector.broadcast %cst_21 : f32 to vector<32x128xf32>
      %56 = arith.select %54, %22, %55 : vector<32x128xi1>, vector<32x128xf32>
      %57 = vector.extract_strided_slice %56 {offsets = [0, 0], sizes = [8, 128], strides = [1, 1]} : vector<32x128xf32> to vector<8x128xf32>
      %58 = vector.extract_strided_slice %56 {offsets = [8, 0], sizes = [8, 128], strides = [1, 1]} : vector<32x128xf32> to vector<8x128xf32>
      %59 = arith.addf %57, %58 : vector<8x128xf32>
      %60 = vector.extract_strided_slice %56 {offsets = [16, 0], sizes = [8, 128], strides = [1, 1]} : vector<32x128xf32> to vector<8x128xf32>
      %61 = arith.addf %59, %60 : vector<8x128xf32>
      %62 = vector.extract_strided_slice %56 {offsets = [24, 0], sizes = [8, 128], strides = [1, 1]} : vector<32x128xf32> to vector<8x128xf32>
      %63 = arith.addf %61, %62 : vector<8x128xf32>
      %64 = arith.truncf %63 : vector<8x128xf32> to vector<8x128xbf16>
      %c0_22 = arith.constant 0 : index
      %c0_23 = arith.constant 0 : index
      %c0_24 = arith.constant 0 : index
      %65 = vector.load %arg7[%c0_22, %c0_23, %c0_24] : memref<1x8x128xbf16, #tpu.memory_space<vmem>>, vector<1x8x128xbf16>
      %66 = vector.shape_cast %65 : vector<1x8x128xbf16> to vector<8x128xbf16>
      %67 = vector.shape_cast %64 : vector<8x128xbf16> to vector<1x8x128xbf16>
      tpu.vector_store %arg7[%c0_22, %c0_23, %c0_24], %67 {strides = array<i32>} : memref<1x8x128xbf16, #tpu.memory_space<vmem>>, vector<1x8x128xbf16>,
      %c0_25 = arith.constant 0 : index
      %c0_26 = arith.constant 0 : index
      %68 = vector.load %arg6[%c0_25, %c0_26] : memref<16x32xbf16, #tpu.memory_space<vmem>>, vector<16x32xbf16>
      %69 = arith.truncf %56 : vector<32x128xf32> to vector<32x128xbf16>
      %cst_27 = arith.constant dense<0.000000e+00> : vector<16x128xf32>
      %70 = tpu.matmul %68, %69, %cst_27 {dimension_numbers = #tpu.dot_dimension_numbers<[1], [0], [0], [1], [0, 0, 1, 1], [], []>} : vector<16x32xbf16>, vector<32x128xbf16>, vector<16x128xf32> -> vector<16x128xf32>
      %71 = arith.truncf %70 : vector<16x128xf32> to vector<16x128xbf16>
      %c0_28 = arith.constant 0 : index
      %c0_29 = arith.constant 0 : index
      %c0_30 = arith.constant 0 : index
      %72 = vector.load %arg8[%c0_28, %c0_29, %c0_30] : memref<1x16x128xbf16, #tpu.memory_space<vmem>>, vector<1x16x128xbf16>
      %73 = vector.shape_cast %72 : vector<1x16x128xbf16> to vector<16x128xbf16>
      %74 = vector.shape_cast %71 : vector<16x128xbf16> to vector<1x16x128xbf16>
      tpu.vector_store %arg8[%c0_28, %c0_29, %c0_30], %74 {strides = array<i32>} : memref<1x16x128xbf16, #tpu.memory_space<vmem>>, vector<1x16x128xbf16>,
    } else {
    }
    return
  }
  func.func @transform_0(%arg0: i32, %arg1: i32) -> (i32, i32, i32) {
    %c0_i32 = arith.constant 0 : i32
    %c0_i32_0 = arith.constant 0 : i32
    return %arg0, %c0_i32, %arg1 : i32, i32, i32
  }
  func.func @transform_1(%arg0: i32, %arg1: i32) -> (i32, i32) {
    %c0_i32 = arith.constant 0 : i32
    %c0_i32_0 = arith.constant 0 : i32
    return %arg1, %c0_i32 : i32, i32
  }
  func.func @transform_2(%arg0: i32, %arg1: i32) -> (i32, i32) {
    %c0_i32 = arith.constant 0 : i32
    %c0_i32_0 = arith.constant 0 : i32
    %c0_i32_1 = arith.constant 0 : i32
    return %c0_i32, %c0_i32_0 : i32, i32
  }
  func.func @transform_3(%arg0: i32, %arg1: i32) -> (i32, i32) {
    %c0_i32 = arith.constant 0 : i32
    %c0_i32_0 = arith.constant 0 : i32
    %c0_i32_1 = arith.constant 0 : i32
    return %c0_i32, %c0_i32_0 : i32, i32
  }
  func.func @transform_4(%arg0: i32, %arg1: i32) -> (i32, i32) {
    %c0_i32 = arith.constant 0 : i32
    %c0_i32_0 = arith.constant 0 : i32
    %c0_i32_1 = arith.constant 0 : i32
    return %c0_i32, %c0_i32_0 : i32, i32
  }
  func.func @transform_5(%arg0: i32, %arg1: i32) -> (i32, i32, i32) {
    %c0_i32 = arith.constant 0 : i32
    %c0_i32_0 = arith.constant 0 : i32
    %c0_i32_1 = arith.constant 0 : i32
    return %arg0, %c0_i32, %c0_i32_0 : i32, i32, i32
  }
  func.func @transform_6(%arg0: i32, %arg1: i32) -> (i32, i32, i32) {
    %c0_i32 = arith.constant 0 : i32
    %c0_i32_0 = arith.constant 0 : i32
    %c0_i32_1 = arith.constant 0 : i32
    return %arg0, %c0_i32, %c0_i32_0 : i32, i32, i32
  }
}

</mosaic_0001>

<bundles_post_ra>
// kernel: tpu_custom_call.1
= control target key start
LH: loop header
LB: loop body
LE: loop exit
PB: predicated region body
PF: predicated region fallthrough
CT: control target
= control target key end

     0   :  { %s1873_s0 = inlined_call_operand.hbm [shape: f32[2,16,256], index: 0, kind: input, shape index: {}]   ;;  %s1874_s1 = inlined_call_operand.hbm [shape: bf16[256,128], index: 1, kind: input, shape index: {}]   ;;  %s1875_s2 = inlined_call_operand.vmem [shape: bf16[32,16], index: 2, kind: input, shape index: {}]   ;;  %s1876_s3 = inlined_call_operand.vmem [shape: f32[32,1], index: 3, kind: input, shape index: {}]   ;;  %s1877_s4 = inlined_call_operand.vmem [shape: bf16[16,32], index: 4, kind: input, shape index: {}]   ;;  %s1878_s5 = inlined_call_operand.hbm [shape: bf16[2,8,128], index: 5, kind: output, shape index: {0}]   ;;  %s1879_s6 = inlined_call_operand.hbm [shape: bf16[2,16,128], index: 6, kind: output, shape index: {1}]  }
   0x1   :  { %1895 = sst [smem:[#allocation20_spill]] %s1873_s0 }
   0x2   :  { %1896 = sst [smem:[#allocation21_spill]] %s1874_s1 }
   0x3   :  { %1897 = sst [smem:[#allocation22_spill]] %s1875_s2 }
   0x4   :  { %1898 = sst [smem:[#allocation23_spill]] %s1876_s3 }
   0x5   :  { %1899 = sst [smem:[#allocation24_spill]] %s1877_s4 }
   0x6   :  { %1900 = sst [smem:[#allocation25_spill]] %s1878_s5 }
   0x7   :  { %1901 = sst [smem:[#allocation26_spill]] %s1879_s6 }
   0x8   :  { %12 = vsyncpa [#allocation4], 0 }
   0x9   :  { %14 = vsyncpa [#allocation4 + $0x1], 0 }
   0xa   :  { %15 = vsyncpa [#allocation7], 0 }
   0xb   :  { %17 = vsyncpa [#allocation7 + $0x1], 0 }
   0xc   :  { %18 = vsyncpa [#allocation5], 0 }
   0xd   :  { %20 = vsyncpa [#allocation5 + $0x1], 0 }
   0xe   :  { %21 = vsyncpa [#allocation10], 0 }
   0xf   :  { %23 = vsyncpa [#allocation10 + $0x1], 0  ;;  %s1431_s21 = smov 0   ;;  %s1433_s22 = smov 0  }
  0x10   :  { %s1435_s23 = smov 0   ;;  %s1437_s24 = smov 0  }
  0x11   :  { %s1439_s25 = smov 0   ;;  %s1441_s26 = smov 0  }
  0x12   :  { %s1443_s27 = smov 0   ;;  %s1445_s28 = smov 0  }
  0x13   :  { %s1447_s29 = smov 0   ;;  %s1449_s30 = smov 0  }
  0x14   :  { %s1451_s7 = smov 0   ;;  %s1453_s8 = smov 0  }
  0x15   :  { %s1455_s9 = smov 0   ;;  %s1457_s10 = smov 0  }
  0x16 LB: > { %1902 = sst [smem:[#allocation15_spill]] %s1325_s21  ;;  %s38_s11 = sadd.s32 1, %s1369_s8  ;;  %s1377_s10 = sphi %s1457_s10, %s29_s10   ;;  %s1373_s9 = sphi %s1455_s9, %s1957_s9   ;;  %s1369_s8 = sphi %s1453_s8, %s1956_s8   ;;  %s1365_s7 = sphi %s1451_s7, %s1955_s7   ;;  %s1361_s30 = sphi %s1449_s30, %s1954_s30   ;;  %s1357_s29 = sphi %s1447_s29, %s1953_s29   ;;  %s1353_s28 = sphi %s1445_s28, %s1952_s28   ;;  %s1349_s27 = sphi %s1443_s27, %s1951_s27   ;;  %s1345_s26 = sphi %s1441_s26, %s1950_s26   ;;  %s1341_s25 = sphi %s1439_s25, %s1949_s25   ;;  %s1337_s24 = sphi %s1437_s24, %s1948_s24   ;;  %s1333_s23 = sphi %s1435_s23, %s1947_s23   ;;  %s1329_s22 = sphi %s1433_s22, %s1946_s22   ;;  %s1325_s21 = sphi %s1431_s21, %s1945_s21  }
  0x17   : > { %1903 = sst [smem:[#allocation16_spill]] %s1361_s30  ;;  %s41_s12 = sadd.s32 1, %s1373_s9 }
  0x18   : > { %1904 = sst [smem:[#allocation17_spill]] %s1365_s7  ;;  %p39_p0 = scmp.ge.s32.totalorder %s38_s11, 2 }
  0x19   : > { %s50_s13 = sadd.s32 1, %s1357_s29  ;;  %p57_p1 = scmp.ne.s32.totalorder %s1357_s29, %s1353_s28 }
  0x1a   : > { %p1888_p2 = scmp.eq.s32.totalorder %s1377_s10, 0  ;;  %s1959_s11 = smov (%p39_p0, %s38_s11), 0 }
  0x1b   : > { %1905 = sst [smem:[#allocation18_spill]] %s1959_s11  ;;  %s1961_s12 = smov (!%p39_p0, %s41_s12), %s1373_s9 }
  0x1c   : > { %s1512_s14 = ssub.s32 %s1369_s8, %s1959_s11  ;;  %p1516_p3 = por %p1888_p2, %p57_p1 }
  0x1d   : > { %p43_p4 = scmp.ge.s32.totalorder %s1961_s12, 2  ;;  %s165_s16 = sadd.s32 1, %s1333_s23 }
  0x1e   : > { %p1887_p7 = scmp.lt.s32.totalorder %s1377_s10, 4  ;;  %s237_s18 = sand.u32 1, %s1357_s29  }
  0x1f   : > { %s1963_s12 = smov (%p43_p4, %s1961_s12), 0  ;;  %s869_s6 = sshll.u32 %s237_s18, 4 }
  0x20   : > { %1907 = sst [smem:[#allocation19_spill]] %s1963_s12  ;;  %s45_s17 = ssub.s32 %s1373_s9, %s1963_s12 }
  0x21   : > { %s47_s19 = sor.u32 %s1512_s14, %s45_s17  ;;  %p163_p8 = scmp.eq.s32.totalorder %s45_s17, 0 }
  0x22   : > { %p48_p9 = scmp.eq.s32.totalorder %s47_s19, 0  ;;  %s870_s5 = sshll.u32 %s1373_s9, 2 }
  0x23   : > { %s1532_s20 = scalar_select %p163_p8, %s1333_s23, %s165_s16  }
  0x24   : > { %s1535_s11 = scalar_select %p48_p9, %s1357_s29, %s50_s13  }
  0x25   : > { %s246_s7 = sadd.s32 %s1369_s8, %s870_s5  ;;  %s241_s3 = scalar_lea.vmem [#allocation3], %s869_s6 }
  0x26   : > { %s871_s4 = sshll.u32 %s246_s7, 7  ;;  %s249_s2 = sshll.u32 %s241_s3, 4  ;;  %s1544_s2 = int_to_ptr.vmem [resolvable:$true] %s249_s2 }
  0x27   : > { %s1908_s0 = sld [smem:[#allocation20_spill]]  ;;  %p1550_p10 = pnand %p1887_p7, %p1516_p3 }
  0x28   : > { %p875_p11 = scmp.ge.s32.totalorder %s1377_s10, 1  ;;  %s1555_s3 = scalar_lea.sflag [#allocation4], %s237_s18 }
  0x29   : > { %p1137_p13 = pneg %p1550_p10 }
  0x2d   : > { %s1542_s21 = scalar_lea.hbm %s1908_s0, %s871_s4  ;;  %s1140_s6 = scalar_lea.hbm %s1908_s0, 1024 }
  0x2e   : > { %s1135_s1 = scalar_lea.hbm %s1542_s21, 256  ;;  %p1141_p3 = scmp.lt.u32.totalorder %s1542_s21, %s1908_s0 }
  0x2f   : > { %p1136_p12 = scmp.ne.s32.totalorder %s1542_s21, %s1135_s1  ;;  %p1142_p4 = scmp.lt.u32.totalorder %s1140_s6, %s1135_s1 }
  0x30   : > { %p1144_p9 = scmp.lt.u32.totalorder %s1135_s1, %s1542_s21 }
  0x31   : > { %p1138_p0 = pnand %p1137_p13, %p1136_p12  ;;  %p1143_p8 = por %p1142_p4, %p1141_p3 }
  0x33   : > { %p1139_p1 = pneg %p1138_p0  ;;  %p1145_p7 = por %p1144_p9, %p1143_p8 }
  0x35   : > { %p1146_p2 = pnand %p1145_p7, %p1139_p1 }
  0x37   : > { %1149 = shalt.err (!%p1146_p2)
}
  0x38   : > { %s1150_s15 = scalar_lea.vmem %s1544_s2, 256  ;;  %s1379_s16 = smov [#allocation3]  }
  0x39   : > { %p1151_p12 = scmp.ne.s32.totalorder %s1544_s2, %s1150_s15  ;;  %s1155_s17 = sshll.u32 %s1379_s16, 4  ;;  %s1156_s17 = int_to_ptr.vmem [resolvable:$false] %s1155_s17 }
  0x3a   : > { %s1157_s18 = scalar_lea.vmem %s1156_s17, 512  ;;  %p1158_p6 = scmp.lt.s32.totalorder %s1544_s2, %s1156_s17 }
  0x3b   : > { %p1153_p0 = pnand %p1151_p12, %p1137_p13  ;;  %p1159_p3 = scmp.lt.s32.totalorder %s1157_s18, %s1150_s15 }
  0x3d   : > { %p1154_p5 = pneg %p1153_p0  ;;  %p1160_p4 = por %p1159_p3, %p1158_p6 }
  0x3f   : > { %p1161_p8 = pnand %p1160_p4, %p1154_p5 }
  0x41   : > { %1164 = shalt.err (!%p1161_p8)
}
  0x42   : > { %s1380_s19 = smov 256   ;;  %s1381_s1 = smov 128  }
  0x43   : > { %s1382_s4 = smov 8   ;;  %s1910_s5 = sld [smem:[#allocation15_spill]] }
  0x44   : > { %984 = dma.hbm_to_vmem [thread:$0]  (!%p1550_p10), %s1542_s21, 256, %s1544_s2, %s1555_s3, %s1380_s19, %s1381_s1, %s1382_s4  }
  0x45   : > { %p278_p2 = scmp.lt.s32.totalorder %s1377_s10, 5  ;;  %s865_s30 = sadd.s32 4294967295, %s1377_s10  }
  0x46   : > { %s866_s7 = sadd.s32 4294967294, %s1377_s10   ;;  %p64_p6 = scmp.eq.s32.totalorder %s865_s30, 0 }
  0x47   : > { %p1586_p5 = pnand %p875_p11, %p278_p2  ;;  %s76_s15 = sadd.s32 1, %s1345_s26 }
  0x48   : > { %p1912_p7 = scmp.eq.s32.totalorder %s1512_s14, 0  ;;  %p1913_p13 = scmp.ne.s32.totalorder %s1353_s28, %s1349_s27 }
  0x49   : > { %p83_p10 = scmp.ne.s32.totalorder %s1345_s26, %s1341_s25  ;;  %p89_p11 = scmp.ne.s32.totalorder %s1341_s25, %s1337_s24 }
  0x4a   : > { %s1596_s16 = scalar_select %p1912_p7, %s1345_s26, %s76_s15  }
  0x4b   : > { %p1601_p1 = por %p64_p6, %p1913_p13  ;;  %p175_p9 = scmp.ne.s32.totalorder %s1333_s23, %s1329_s22 }
  0x4c   : > { %p1915_p12 = scmp.eq.s32.totalorder %s1377_s10, 0  ;;  %p176_p3 = scmp.eq.s32.totalorder %s865_s30, 3 }
  0x4d   : > { %s1914_s13 = scalar_select %p1601_p1, 1, 0 }
  0x4e   : > { %p85_p0 = por %p83_p10, %p1915_p12  ;;  %p1613_p4 = por %p89_p11, %p64_p6 }
  0x4f   : > { %p181_p8 = scmp.ne.s32.totalorder %s1329_s22, %s1910_s5  ;;  %p1619_p2 = por %p176_p3, %p175_p9 }
  0x50   : > { %s1916_s2 = scalar_select %p1613_p4, 1, 0 }
  0x51   : > { %s1917_s21 = scalar_select %p1619_p2, 1, 0 }
  0x52   : > { %p182_p7 = scmp.eq.s32.totalorder %s866_s7, 3  ;;  %s259_s27 = sand.u32 1, %s1345_s26  }
  0x53   : > { %s915_s14 = sshll.u32 %s1369_s8, 10  ;;  %s872_s24 = sshll.u32 %s259_s27, 6 }
  0x54   : > { %p1625_p13 = por %p182_p7, %p181_p8  ;;  %s1919_s19 = sld [smem:[#allocation21_spill]] }
  0x55   : > { %p1920_p6 = scmp.lt.s32.totalorder %s1377_s10, 4  ;;  %s263_s5 = scalar_lea.vmem [#allocation6], %s872_s24 }
  0x56   : > { %s1918_s3 = scalar_select %p1625_p13, 1, 0 }
  0x57   : > { %p1636_p10 = pnand %p1920_p6, %p85_p0  ;;  %s270_s30 = sshll.u32 %s263_s5, 4  ;;  %s1640_s30 = int_to_ptr.vmem [resolvable:$true] %s270_s30 }
  0x58   : > { %s1642_s7 = scalar_lea.sflag [#allocation7], %s259_s27 }
  0x59   : > { %p1167_p9 = pneg %p1636_p10 }
  0x5a   : > { %s1632_s1 = scalar_lea.hbm %s1919_s19, %s915_s14  ;;  %s1170_s18 = scalar_lea.hbm %s1919_s19, 2048 }
  0x5b   : > { %s1165_s15 = scalar_lea.hbm %s1632_s1, 1024  ;;  %p1171_p0 = scmp.lt.u32.totalorder %s1632_s1, %s1919_s19 }
  0x5c   : > { %p1166_p11 = scmp.ne.s32.totalorder %s1632_s1, %s1165_s15  ;;  %p1172_p8 = scmp.lt.u32.totalorder %s1170_s18, %s1165_s15 }
  0x5d   : > { %p1174_p6 = scmp.lt.u32.totalorder %s1165_s15, %s1632_s1 }
  0x5e   : > { %p1168_p12 = pnand %p1167_p9, %p1166_p11  ;;  %p1173_p7 = por %p1172_p8, %p1171_p0 }
  0x60   : > { %p1169_p3 = pneg %p1168_p12  ;;  %p1175_p13 = por %p1174_p6, %p1173_p7 }
  0x62   : > { %p1176_p2 = pnand %p1175_p13, %p1169_p3 }
  0x64   : > { %1179 = shalt.err (!%p1176_p2)
}
  0x65   : > { %s1180_s27 = scalar_lea.vmem %s1640_s30, 1024  ;;  %s1383_s24 = smov [#allocation6]  }
  0x66   : > { %p1181_p11 = scmp.ne.s32.totalorder %s1640_s30, %s1180_s27  ;;  %s1185_s5 = sshll.u32 %s1383_s24, 4  ;;  %s1186_s5 = int_to_ptr.vmem [resolvable:$false] %s1185_s5 }
  0x67   : > { %s1187_s0 = scalar_lea.vmem %s1186_s5, 2048  ;;  %p1188_p1 = scmp.lt.s32.totalorder %s1640_s30, %s1186_s5 }
  0x68   : > { %p1183_p12 = pnand %p1181_p11, %p1167_p9  ;;  %p1189_p0 = scmp.lt.s32.totalorder %s1187_s0, %s1180_s27 }
  0x6a   : > { %p1184_p4 = pneg %p1183_p12  ;;  %p1190_p8 = por %p1189_p0, %p1188_p1 }
  0x6c   : > { %p1191_p7 = pnand %p1190_p8, %p1184_p4 }
  0x6e   : > { %1194 = shalt.err (!%p1191_p7)
}
  0x6f   : > { %s1384_s12 = smov 64   ;;  %s1385_s15 = smov 4  }
  0x70   : > { %987 = dma.hbm_to_vmem [thread:$0]  (!%p1636_p10), %s1632_s1, 1024, %s1640_s30, %s1642_s7, %s1384_s12, %s1384_s12, %s1385_s15  }
  0x71   : > { %282 = sbr.rel (%p1586_p5) target bundleno = 901 (0x385), region = 40  ;;  %s284_s14 = sand.u32 (!%p1586_p5), 1, %s1353_s28  }
  0x72   : > { %s1673_s17 = sshll.u32 (!%p1586_p5), %s284_s14, 4  ;;  %s285_s18 = scalar_lea.sflag (!%p1586_p5), [#allocation4], %s284_s14 }
  0x73   : > { %s288_s27 = scalar_lea.vmem (!%p1586_p5), [#allocation3], %s1673_s17  ;;  %p1922_p1 = scmp.ne.s32.totalorder (!%p1586_p5), %s1914_s13, 0 }
  0x78   : > { %1308 = dma.done.wait (%p1922_p1), %s285_s18, 256  }
  0x79   : > { %1310 = vsyncadd (%p1922_p1), %s285_s18, 4294967040  ;;  %s293_s4 = sand.u32 1, %s1341_s25   ;;  %p1923_p5 = scmp.ne.s32.totalorder %s1916_s2, 0 }
  0x7a   : > { %s877_s1 = sshll.u32 %s293_s4, 6  ;;  %s294_s30 = scalar_lea.sflag [#allocation7], %s293_s4 }
  0x7b   : > { %s1681_s6 = scalar_lea.vmem [#allocation6], %s877_s1 }
  0x7c   : > { %1312 = dma.done.wait (%p1923_p5), %s294_s30, 1024  }
  0x7d   : > { %1314 = vsyncadd (%p1923_p5), %s294_s30, 4294966272  ;;  %s1688_s7 = sand.u32 1, %s1329_s22   ;;  %s1924_s12 = sld [smem:[#allocation16_spill]] }
  0x7e   : > { %s878_s24 = sshll.u32 %s1688_s7, 2  ;;  %s879_s13 = sshll.u32 %s1688_s7, 3 }
  0x7f   : > { %s1692_s5 = scalar_lea.vmem [#allocation8], %s878_s24  ;;  %s1694_s0 = scalar_lea.vmem [#allocation9], %s879_s13 }
  0x83   : > { %p880_p4 = scmp.ne.s32.totalorder %s1924_s12, 0 }
  0x84   : > { %v1386_v0 = vmov (!%p880_p4), 0.0  }
  0x85   : > { %341 = sbr.rel (%p880_p4) target bundleno = 140 (0x8c), region = 52  ;;  %342 = vst [vmem:[#allocation2] sm:$0xff] (!%p880_p4), %v1386_v0  ;;  %343 = vst [vmem:[#allocation2 + $0x8] sm:$0xff] (!%p880_p4), %v1386_v0 }
  0x8c PF: > { %v1122_v1 = vld [vmem:[%s1681_s6] sm:$0xff]   ;;  %v1387_v2 = vmov 0.0   ;;  %v1123_v3 = vld [vmem:[%s1681_s6 + $0x8] sm:$0xff]   ;;  %vm1388_vm0 = vmmov 0   ;;  %v1124_v4 = vld [vmem:[%s1681_s6 + $0x10] sm:$0xff]   ;;  %s1925_s2 = sld [smem:[#allocation16_spill]] }
  0x8d   : > { %939 = vmatprep.subr.bf16.mxu0 %v1387_v2  ;;  %955 = vmatprep.mubr.msk.bf16.mxu0 %vm1388_vm0, %v1387_v2  ;;  %v1125_v5 = vld [vmem:[%s1681_s6 + $0x18] sm:$0xff]   ;;  %v1126_v6 = vld [vmem:[%s1681_s6 + $0x20] sm:$0xff]   ;;  %v1127_v7 = vld [vmem:[%s1681_s6 + $0x28] sm:$0xff]  }
  0x8e   : > { %940 = vmatpush3.bf16.msra.mxu0 %v1122_v1  ;;  %v1128_v8 = vld [vmem:[%s1681_s6 + $0x30] sm:$0xff]   ;;  %v1129_v9 = vld [vmem:[%s1681_s6 + $0x38] sm:$0xff]  }
  0x8f   : > { %941 = vmatprep.subr.bf16.mxu0 %v1387_v2  ;;  %v344_v10 = vld [vmem:[%s288_s27] sm:$0xff]  ;;  %v345_v11 = vld [vmem:[%s288_s27 + $0x8] sm:$0xff] }
  0x90   : > { %v346_v12 = vpack.c.bf16 %v345_v11, %v344_v10  ;;  %v347_v13 = vld [vmem:[#allocation2] sm:$0xff]  ;;  %v348_v15 = vld [vmem:[#allocation2 + $0x8] sm:$0xff] }
  0x92   : > { %942 = vmatpush3.bf16.msra.mxu0 %v1123_v3  ;;  %p889_p2 = scmp.ne.s32.totalorder %s1925_s2, 1 }
  0x93   : > { %943 = vmatprep.subr.bf16.mxu0 %v1387_v2  ;;  %vm503_vm1 = vcmask (!%p889_p2), 130048   ;;  %s1926_s17 = sld [smem:[#allocation22_spill]] (!%p889_p2)  ;;  %v1389_v25 = vmov (!%p889_p2), 0   ;;  %s1927_s4 = sld [smem:[#allocation23_spill]] (!%p889_p2)  ;;  %v1390_v31 = vmov (!%p889_p2), 0.0   ;;  %vm1391_vm2 = vmmov (!%p889_p2), 0  }
  0x94   : > { %1130 = vset.pattern.permute.xlu0 (!%p889_p2), %v1389_v25  ;;  %1131 = vset.pattern.permute.xlu1 (!%p889_p2), %v1389_v25  ;;  %v568_v32 = vlaneseq (!%p889_p2)  ;;  %s1934_s27 = sld [smem:[#allocation24_spill]] (!%p889_p2) }
  0x95   : > { %965 = vmatprep.subr.bf16.mxu1 (!%p889_p2), %v1390_v31  ;;  %969 = vmatprep.mubr.msk.bf16.mxu1 (!%p889_p2), %vm1391_vm2, %v1390_v31 }
  0x96   : > { %944 = vmatpush3.bf16.msra.mxu0 %v1124_v4  ;;  %v569_v33 = vand.u32 (!%p889_p2), 127, %v568_v32 }
  0x97   : > { %945 = vmatprep.subr.bf16.mxu0 %v1387_v2 }
  0x98   : > { %vm578_vm3 = vcmp.ge.s32.totalorder (!%p889_p2), %v569_v33, 1  ;;  %vm592_vm4 = vcmp.ge.s32.totalorder (!%p889_p2), %v569_v33, 5  ;;  %vm607_vm5 = vcmp.ge.s32.totalorder (!%p889_p2), %v569_v33, 14  ;;  %vm614_vm7 = vcmp.lt.s32.totalorder (!%p889_p2), %v569_v33, 50 }
  0x99   : > { %v1132_v24 = vld [vmem:[%s1926_s17] sm:$0xff] (!%p889_p2)   ;;  %v1133_v27 = vld [vmem:[%s1926_s17 + $0x8] sm:$0xff] (!%p889_p2)   ;;  %v471_v28 = vld [vmem:[%s1927_s4 + $0x10] sm:$0xff] (!%p889_p2)  ;;  %v579_v34 = vsel (!%p889_p2), %vm578_vm3, 1, %v1389_v25  ;;  %v593_v35 = vsel (!%p889_p2), %vm592_vm4, 1, %v1389_v25  ;;  %v608_v37 = vsel (!%p889_p2), %vm607_vm5, 1, %v1389_v25 }
  0x9a   : > { %946 = vmatpush3.bf16.msra.mxu0 %v1125_v5  ;;  %v469_v26 = vld [vmem:[%s1927_s4] sm:$0xff] (!%p889_p2)  ;;  %485 = vperm.xlu1 (!%p889_p2), %1131, %v471_v28   ;;  %v470_v29 = vld [vmem:[%s1927_s4 + $0x8] sm:$0xff] (!%p889_p2)  ;;  %v472_v30 = vld [vmem:[%s1927_s4 + $0x18] sm:$0xff] (!%p889_p2)  ;;  %v594_v36 = vadd.s32 (!%p889_p2), %v593_v35, %v579_v34 }
  0x9b   : > { %947 = vmatprep.subr.bf16.mxu0 %v1387_v2  ;;  %475 = vperm.xlu0 (!%p889_p2), %1130, %v469_v26   ;;  %v1134_v3 = vld [vmem:[%s1934_s27] sm:$0xff] (!%p889_p2)  }
  0x9c   : > { %v609_v39 = vadd.s32 (!%p889_p2), %v608_v37, %v594_v36 }
  0x9e   : > { %948 = vmatpush3.bf16.msra.mxu0 %v1126_v6  ;;  %490 = vperm.xlu1 (!%p889_p2), %1131, %v472_v30   ;;  %vm896_vm6 = vcmp.eq.s32.totalorder (!%p889_p2), %v609_v39, 2  ;;  %vm894_vm8 = vcmp.eq.s32.totalorder (!%p889_p2), %v609_v39, 0  ;;  %vm897_vm9 = vcmp.eq.s32.totalorder (!%p889_p2), %v609_v39, 3  ;;  %vm895_vm11 = vcmp.eq.s32.totalorder (!%p889_p2), %v609_v39, 1 }
  0x9f   : > { %949 = vmatprep.subr.bf16.mxu0 %v1387_v2  ;;  %480 = vperm.xlu0 (!%p889_p2), %1130, %v470_v29   ;;  %vm1731_vm10 = vmand (!%p889_p2), %vm896_vm6, %vm614_vm7 }
  0xa0   : > { %vm1736_vm12 = vmand (!%p889_p2), %vm894_vm8, %vm614_vm7 }
  0xa1   : > { %vm1741_vm13 = vmand (!%p889_p2), %vm897_vm9, %vm614_vm7 }
  0xa2   : > { %950 = vmatpush3.bf16.msra.mxu0 %v1127_v7  ;;  %vm616_vm14 = vmand (!%p889_p2), %vm895_vm11, %vm614_vm7 }
  0xa3   : > { %951 = vmatprep.subr.bf16.mxu0 %v1387_v2  ;;  %vm899_vm15 = vmpackc.low (!%p889_p2), %vm616_vm14, %vm1736_vm12 }
  0xa4   : > { %vm902_vm0 = vmpackc.low (!%p889_p2), %vm1741_vm13, %vm1731_vm10 }
  0xa6   : > { %952 = vmatpush3.bf16.msra.mxu0 %v1128_v8 }
  0xa7   : > { %953 = vmatprep.subr.bf16.mxu0 %v1387_v2 }
  0xaa   : > { %954 = vmatpush3.bf16.msra.mxu0 %v1129_v9 }
  0xad   : > { %956 = vmatmul.mubr.bf16.vlgmr.msra.gmra.mrb[0].mxu0 %v346_v12 }
  0xae   : > { %961 = vmatprep.mubr.msk.bf16.mxu0 (!%p889_p2), %vm503_vm1, %v1132_v24 }
 0x119   : > { %v486_v38 = vpop.permute.xlu1 (!%p889_p2), %485 }
 0x11a   : > { %v476_v40 = vpop.permute.xlu0 (!%p889_p2), %475 }
 0x11d   : > { %v491_v42 = vpop.permute.xlu1 (!%p889_p2), %490 }
 0x11e   : > { %v481_v49 = vpop.permute.xlu0 (!%p889_p2), %480 }
 0x17f   : > { %461 = sbr.rel (%p889_p2) target bundleno = 848 (0x350), region = 56 }
 0x180   : > { %v447_v14 = vpop.f32.mrb[0].mxu0 }
 0x181   : > { %v454_v16 = vadd.f32 %v447_v14, %v347_v13  ;;  %v957_v17 = vpop.f32.mrb[1].mxu0 }
 0x182   : > { %v450_v18 = vpop.f32.mrb[2].mxu0 }
 0x183   : > { %456 = vst [vmem:[#allocation2] sm:$0xff] %v454_v16  ;;  %v455_v19 = vadd.f32 %v450_v18, %v348_v15  ;;  %v958_v20 = vpop.f32.mrb[3].mxu0 }
 0x185   : > { %457 = vst [vmem:[#allocation2 + $0x8] sm:$0xff] %v455_v19 }
 0x18a   : > { %v462_v21 = vld [vmem:[#allocation2] sm:$0xff] }
 0x18c   : > { %v463_v22 = vld [vmem:[#allocation2 + $0x8] sm:$0xff] }
 0x18d   : > { %v464_v23 = vpack.c.bf16 %v463_v22, %v462_v21 }
 0x18f   : > { %959 = vmatprep.subr.bf16.mxu0 %v464_v23 }
 0x190   : > { %960 = vmatpush3.bf16.msra.mxu0 %v464_v23 }
 0x193   : > { %962 = vmatmul.mubr.msk.bf16.vlgmr.msra.gmra.mrb[0].mxu0 %vm503_vm1, %v1133_v27  ;;  %vm637_vm1 = vcmask 261120  }
 0x266   : > { %v963_v41 = vpop.f32.mrb[0].mxu0 }
 0x267   : > { %v553_v43 = vadd.f32 %v963_v41, %v486_v38  ;;  %v544_v45 = vpop.f32.mrb[1].mxu0 }
 0x268   : > { %v545_v46 = vadd.f32 %v544_v45, %v476_v40  ;;  %v964_v47 = vpop.f32.mrb[2].mxu0 }
 0x269   : > { %v561_v50 = vmax.f32 %v553_v43, 0.0  ;;  %v556_v51 = vadd.f32 %v964_v47, %v491_v42  ;;  %v547_v53 = vpop.f32.mrb[3].mxu0 }
 0x26a   : > { %v559_v54 = vmax.f32 %v545_v46, 0.0  ;;  %v548_v55 = vadd.f32 %v547_v53, %v481_v49 }
 0x26b   : > { %v621_v56 = vsel %vm1731_vm10, %v561_v50, 0.0  ;;  %v562_v57 = vmax.f32 %v556_v51, 0.0 }
 0x26c   : > { %v560_v58 = vmax.f32 %v548_v55, 0.0  ;;  %v619_v59 = vsel %vm1736_vm12, %v559_v54, 0.0 }
 0x26d   : > { %v622_v60 = vsel %vm1741_vm13, %v562_v57, 0.0  ;;  %v903_v61 = vpack.c.bf16 %v562_v57, %v561_v50 }
 0x26e   : > { %v900_v62 = vpack.c.bf16 %v560_v58, %v559_v54  ;;  %v620_v63 = vsel %vm616_vm14, %v560_v58, 0.0 }
 0x26f   : > { %v623_v0 = vadd.f32 %v620_v63, %v619_v59 }
 0x270   : > { %966 = vmatpush3.bf16.msk.msra.mxu1 %vm899_vm15, %v900_v62 }
 0x271   : > { %v624_v1 = vadd.f32 %v623_v0, %v621_v56  ;;  %967 = vmatprep.subr.bf16.mxu1 %v1390_v31 }
 0x273   : > { %v625_v2 = vadd.f32 %v624_v1, %v622_v60 }
 0x274   : > { %968 = vmatpush3.bf16.msk.msra.mxu1 %vm902_vm0, %v903_v61 }
 0x275   : > { %v626_v4 = vpack.c.bf16 %v625_v2, %v625_v2 }
 0x277   : > { %627 = vst [vmem:[%s1692_s5] sm:$0xf] %v626_v4  ;;  %970 = vmatmul.mubr.msk.bf16.vlgmr.msra.gmra.mrb[0].mxu1 %vm637_vm1, %v1134_v3 }
 0x34a   : > { %v675_v5 = vpop.f32.mrb[0].mxu1 }
 0x34b   : > { %v971_v6 = vpop.f32.mrb[1].mxu1 }
 0x34c   : > { %v678_v7 = vpop.f32.mrb[2].mxu1 }
 0x34d   : > { %v922_v8 = vpack.c.bf16 %v678_v7, %v675_v5  ;;  %v972_v9 = vpop.f32.mrb[3].mxu1 }
 0x34f   : > { %923 = vst [vmem:[%s1694_s0] sm:$0xff] %v922_v8  }
 0x350 PF: > { %s1935_s1 = sld [smem:[#allocation17_spill]]  ;;  %s1936_s13 = sld [smem:[#allocation25_spill]] }
 0x351   : > { %s711_s2 = sshll.u32 %s1692_s5, 4  ;;  %s693_s15 = scalar_lea.sflag [#allocation5], %s1688_s7  ;;  %s712_s2 = int_to_ptr.vmem [resolvable:$true] %s711_s2 }
 0x352   : > { %s1195_s14 = scalar_lea.vmem %s712_s2, 64  ;;  %p1937_p10 = scmp.ne.s32.totalorder %s1917_s21, 0 }
 0x353   : > { %p1196_p13 = scmp.ne.s32.totalorder %s712_s2, %s1195_s14  ;;  %s1392_s18 = smov [#allocation8]  }
 0x354   : > { %s1199_s27 = sshll.u32 %s1392_s18, 4  ;;  %s1200_s27 = int_to_ptr.vmem [resolvable:$false] %s1199_s27 }
 0x355   : > { %p1197_p9 = pnand %p1196_p13, %p1937_p10  ;;  %s1201_s4 = scalar_lea.vmem %s1200_s27, 128 }
 0x356   : > { %s910_s30 = sshll.u32 %s1935_s1, 6  ;;  %p1202_p6 = scmp.lt.s32.totalorder %s712_s2, %s1200_s27 }
 0x357   : > { %s1767_s12 = scalar_lea.hbm %s1936_s13, %s910_s30  ;;  %p1198_p3 = pneg %p1197_p9 }
 0x358   : > { %p1203_p11 = scmp.lt.s32.totalorder %s1201_s4, %s1195_s14 }
 0x35a   : > { %p1204_p12 = por %p1203_p11, %p1202_p6 }
 0x35c   : > { %p1205_p0 = pnand %p1204_p12, %p1198_p3 }
 0x35e   : > { %1208 = shalt.err (!%p1205_p0)
}
 0x35f   : > { %s1209_s5 = scalar_lea.hbm %s1767_s12, 64  ;;  %s1213_s24 = scalar_lea.hbm %s1936_s13, 128 }
 0x360   : > { %p1210_p8 = scmp.ne.s32.totalorder %s1767_s12, %s1209_s5  ;;  %p1214_p5 = scmp.lt.u32.totalorder %s1767_s12, %s1936_s13 }
 0x361   : > { %p1215_p4 = scmp.lt.u32.totalorder %s1213_s24, %s1209_s5  ;;  %p1217_p13 = scmp.lt.u32.totalorder %s1209_s5, %s1767_s12 }
 0x362   : > { %p1211_p7 = pnand %p1210_p8, %p1937_p10 }
 0x363   : > { %p1216_p2 = por %p1215_p4, %p1214_p5 }
 0x364   : > { %p1212_p1 = pneg %p1211_p7 }
 0x365   : > { %p1218_p9 = por %p1217_p13, %p1216_p2 }
 0x367   : > { %p1219_p3 = pnand %p1218_p9, %p1212_p1 }
 0x369   : > { %1222 = shalt.err (!%p1219_p3)
}
 0x36a   : > { %977 = dma.vmem_to_hbm [thread:$0]  (%p1937_p10), %s712_s2, 64, %s1767_s12, %s693_s15  }
 0x36b   : > { %s918_s4 = sshll.u32 %s1935_s1, 7  ;;  %s724_s14 = sshll.u32 %s1694_s0, 4  ;;  %s1795_s14 = int_to_ptr.vmem [resolvable:$true] %s724_s14 }
 0x36c   : > { %s1938_s18 = sld [smem:[#allocation26_spill]]  ;;  %s698_s5 = scalar_lea.sflag [#allocation10], %s1688_s7 }
 0x36d   : > { %s1223_s24 = scalar_lea.vmem %s1795_s14, 128  ;;  %s1393_s13 = smov [#allocation9]  }
 0x36e   : > { %p1224_p6 = scmp.ne.s32.totalorder %s1795_s14, %s1223_s24  ;;  %s1227_s12 = sshll.u32 %s1393_s13, 4  ;;  %s1228_s12 = int_to_ptr.vmem [resolvable:$false] %s1227_s12 }
 0x36f   : > { %s1229_s0 = scalar_lea.vmem %s1228_s12, 256  ;;  %p1230_p0 = scmp.lt.s32.totalorder %s1795_s14, %s1228_s12 }
 0x370   : > { %p1225_p11 = pnand %p1224_p6, %p1937_p10  ;;  %p1231_p8 = scmp.lt.s32.totalorder %s1229_s0, %s1223_s24 }
 0x372   : > { %s1793_s27 = scalar_lea.hbm %s1938_s18, %s918_s4  ;;  %p1226_p12 = pneg %p1225_p11 }
 0x373   : > { %p1232_p7 = por %p1231_p8, %p1230_p0 }
 0x375   : > { %p1233_p1 = pnand %p1232_p7, %p1226_p12 }
 0x377   : > { %1236 = shalt.err (!%p1233_p1)
}
 0x378   : > { %s1237_s1 = scalar_lea.hbm %s1793_s27, 128  ;;  %s1241_s13 = scalar_lea.hbm %s1938_s18, 256 }
 0x379   : > { %p1238_p5 = scmp.ne.s32.totalorder %s1793_s27, %s1237_s1  ;;  %p1242_p13 = scmp.lt.u32.totalorder %s1793_s27, %s1938_s18 }
 0x37a   : > { %p1243_p9 = scmp.lt.u32.totalorder %s1241_s13, %s1237_s1  ;;  %p1245_p6 = scmp.lt.u32.totalorder %s1237_s1, %s1793_s27 }
 0x37b   : > { %p1239_p4 = pnand %p1238_p5, %p1937_p10 }
 0x37c   : > { %p1244_p3 = por %p1243_p9, %p1242_p13 }
 0x37d   : > { %p1240_p2 = pneg %p1239_p4 }
 0x37e   : > { %p1246_p11 = por %p1245_p6, %p1244_p3 }
 0x380   : > { %p1247_p12 = pnand %p1246_p11, %p1240_p2 }
 0x382   : > { %1250 = shalt.err (!%p1247_p12)
}
 0x383   : > { %s1394_s6 = smov 64   ;;  %s1395_s24 = smov 4  }
 0x384   : > { %978 = dma.vmem_to_hbm [thread:$0]  (%p1937_p10), %s1795_s14, 128, %s1793_s27, %s698_s5, %s1394_s6, %s1394_s6, %s1395_s24  }
 0x385 PF: > { %s1939_s12 = sld [smem:[#allocation15_spill]]  ;;  %p996_p0 = scmp.ge.s32.totalorder %s1377_s10, 2 }
 0x386   : > { %p1940_p8 = scmp.ne.s32.totalorder %s1918_s3, 0 }
 0x388   : > { %p989_p7 = pnand %p996_p0, %p1940_p8 }
 0x38b   : > { %s739_s0 = sand.u32 1, %s1939_s12  }
 0x38c   : > { %s740_s1 = scalar_lea.sflag [#allocation5], %s739_s0 }
 0x38d   : > { %1316 = dma.done.wait (!%p989_p7), %s740_s1, 64  }
 0x38e   : > { %1318 = vsyncadd (!%p989_p7), %s740_s1, 4294967232  ;;  %s749_s2 = scalar_lea.sflag [#allocation10], %s739_s0 }
 0x38f   : > { %1320 = dma.done.wait (!%p989_p7), %s749_s2, 128  }
 0x390   : > { %1322 = vsyncadd (!%p989_p7), %s749_s2, 4294967168  ;;  %s29_s10 = sadd.s32 1, %s1377_s10   ;;  %s1942_s3 = sld [smem:[#allocation18_spill]] }
 0x391   : > { %p1826_p1 = scmp.ge.s32.totalorder %s29_s10, 6   ;;  %s1943_s14 = sld [smem:[#allocation19_spill]] }
 0x392   : > { %s1945_s21 = smov %s1329_s22  ;;  %s1946_s22 = smov %s1333_s23 }
 0x393   : > { %s1947_s23 = smov %s1532_s20  ;;  %s1948_s24 = smov %s1341_s25 }
 0x394   : > { %s1949_s25 = smov %s1345_s26  ;;  %s1950_s26 = smov %s1596_s16 }
 0x395   : > { %s1951_s27 = smov %s1353_s28  ;;  %s1952_s28 = smov %s1357_s29 }
 0x396   : > { %s1953_s29 = smov %s1535_s11  ;;  %s1954_s30 = smov %s1369_s8 }
 0x397   : > { %s1955_s7 = smov %s1373_s9  ;;  %s1956_s8 = smov %s1942_s3 }
 0x398   : > { %s1957_s9 = smov %s1943_s14  ;;  %28 = sbr.rel (!%p1826_p1) target bundleno = 22 (0x16), region = 123 }
 0x39f   :  { %754 = vsyncpa [#allocation4], 1 }
 0x3a0   :  { %756 = vsyncpa [#allocation4 + $0x1], 1 }
 0x3a1   :  { %757 = vsyncpa [#allocation7], 1 }
 0x3a2   :  { %759 = vsyncpa [#allocation7 + $0x1], 1 }
 0x3a3   :  { %760 = vsyncpa [#allocation5], 1 }
 0x3a4   :  { %762 = vsyncpa [#allocation5 + $0x1], 1 }
 0x3a5   :  { %763 = vsyncpa [#allocation10], 1 }
 0x3a6   :  { %765 = vsyncpa [#allocation10 + $0x1], 1 }

// kernel: tpu_custom_call.1
= control target key start
LH: loop header
LB: loop body
LE: loop exit
PB: predicated region body
PF: predicated region fallthrough
CT: control target
= control target key end

     0   :  { %s1873_s0 = inlined_call_operand.hbm [shape: f32[2,16,256], index: 0, kind: input, shape index: {}]   ;;  %s1874_s1 = inlined_call_operand.hbm [shape: bf16[256,128], index: 1, kind: input, shape index: {}]   ;;  %s1875_s2 = inlined_call_operand.vmem [shape: bf16[32,16], index: 2, kind: input, shape index: {}]   ;;  %s1876_s3 = inlined_call_operand.vmem [shape: f32[32,1], index: 3, kind: input, shape index: {}]   ;;  %s1877_s4 = inlined_call_operand.vmem [shape: bf16[16,32], index: 4, kind: input, shape index: {}]   ;;  %s1878_s5 = inlined_call_operand.hbm [shape: bf16[2,8,128], index: 5, kind: output, shape index: {0}]   ;;  %s1879_s6 = inlined_call_operand.hbm [shape: bf16[2,16,128], index: 6, kind: output, shape index: {1}]  }
   0x1   :  { %1895 = sst [smem:[#allocation20_spill]] %s1873_s0 }
   0x2   :  { %1896 = sst [smem:[#allocation21_spill]] %s1874_s1 }
   0x3   :  { %1897 = sst [smem:[#allocation22_spill]] %s1875_s2 }
   0x4   :  { %1898 = sst [smem:[#allocation23_spill]] %s1876_s3 }
   0x5   :  { %1899 = sst [smem:[#allocation24_spill]] %s1877_s4 }
   0x6   :  { %1900 = sst [smem:[#allocation25_spill]] %s1878_s5 }
   0x7   :  { %1901 = sst [smem:[#allocation26_spill]] %s1879_s6 }
   0x8   :  { %12 = vsyncpa [#allocation4], 0 }
   0x9   :  { %14 = vsyncpa [#allocation4 + $0x1], 0 }
   0xa   :  { %15 = vsyncpa [#allocation7], 0 }
   0xb   :  { %17 = vsyncpa [#allocation7 + $0x1], 0 }
   0xc   :  { %18 = vsyncpa [#allocation5], 0 }
   0xd   :  { %20 = vsyncpa [#allocation5 + $0x1], 0 }
   0xe   :  { %21 = vsyncpa [#allocation10], 0 }
   0xf   :  { %23 = vsyncpa [#allocation10 + $0x1], 0  ;;  %s1431_s21 = smov 0   ;;  %s1433_s22 = smov 0  }
  0x10   :  { %s1435_s23 = smov 0   ;;  %s1437_s24 = smov 0  }
  0x11   :  { %s1439_s25 = smov 0   ;;  %s1441_s26 = smov 0  }
  0x12   :  { %s1443_s27 = smov 0   ;;  %s1445_s28 = smov 0  }
  0x13   :  { %s1447_s29 = smov 0   ;;  %s1449_s30 = smov 0  }
  0x14   :  { %s1451_s7 = smov 0   ;;  %s1453_s8 = smov 0  }
  0x15   :  { %s1455_s9 = smov 0   ;;  %s1457_s10 = smov 0  }
  0x16 LB: > { %1902 = sst [smem:[#allocation15_spill]] %s1325_s21  ;;  %s38_s11 = sadd.s32 1, %s1369_s8  ;;  %s1377_s10 = sphi %s1457_s10, %s29_s10   ;;  %s1373_s9 = sphi %s1455_s9, %s1957_s9   ;;  %s1369_s8 = sphi %s1453_s8, %s1956_s8   ;;  %s1365_s7 = sphi %s1451_s7, %s1955_s7   ;;  %s1361_s30 = sphi %s1449_s30, %s1954_s30   ;;  %s1357_s29 = sphi %s1447_s29, %s1953_s29   ;;  %s1353_s28 = sphi %s1445_s28, %s1952_s28   ;;  %s1349_s27 = sphi %s1443_s27, %s1951_s27   ;;  %s1345_s26 = sphi %s1441_s26, %s1950_s26   ;;  %s1341_s25 = sphi %s1439_s25, %s1949_s25   ;;  %s1337_s24 = sphi %s1437_s24, %s1948_s24   ;;  %s1333_s23 = sphi %s1435_s23, %s1947_s23   ;;  %s1329_s22 = sphi %s1433_s22, %s1946_s22   ;;  %s1325_s21 = sphi %s1431_s21, %s1945_s21  }
  0x17   : > { %1903 = sst [smem:[#allocation16_spill]] %s1361_s30  ;;  %s41_s12 = sadd.s32 1, %s1373_s9 }
  0x18   : > { %1904 = sst [smem:[#allocation17_spill]] %s1365_s7  ;;  %p39_p0 = scmp.ge.s32.totalorder %s38_s11, 2 }
  0x19   : > { %s50_s13 = sadd.s32 1, %s1357_s29  ;;  %p57_p1 = scmp.ne.s32.totalorder %s1357_s29, %s1353_s28 }
  0x1a   : > { %p1888_p2 = scmp.eq.s32.totalorder %s1377_s10, 0  ;;  %s1959_s11 = smov (%p39_p0, %s38_s11), 0 }
  0x1b   : > { %1905 = sst [smem:[#allocation18_spill]] %s1959_s11  ;;  %s1961_s12 = smov (!%p39_p0, %s41_s12), %s1373_s9 }
  0x1c   : > { %s1512_s14 = ssub.s32 %s1369_s8, %s1959_s11  ;;  %p1516_p3 = por %p1888_p2, %p57_p1 }
  0x1d   : > { %p43_p4 = scmp.ge.s32.totalorder %s1961_s12, 2  ;;  %s165_s16 = sadd.s32 1, %s1333_s23 }
  0x1e   : > { %p1887_p7 = scmp.lt.s32.totalorder %s1377_s10, 4  ;;  %s237_s18 = sand.u32 1, %s1357_s29  }
  0x1f   : > { %s1963_s12 = smov (%p43_p4, %s1961_s12), 0  ;;  %s869_s6 = sshll.u32 %s237_s18, 4 }
  0x20   : > { %1907 = sst [smem:[#allocation19_spill]] %s1963_s12  ;;  %s45_s17 = ssub.s32 %s1373_s9, %s1963_s12 }
  0x21   : > { %s47_s19 = sor.u32 %s1512_s14, %s45_s17  ;;  %p163_p8 = scmp.eq.s32.totalorder %s45_s17, 0 }
  0x22   : > { %p48_p9 = scmp.eq.s32.totalorder %s47_s19, 0  ;;  %s870_s5 = sshll.u32 %s1373_s9, 2 }
  0x23   : > { %s1532_s20 = scalar_select %p163_p8, %s1333_s23, %s165_s16  }
  0x24   : > { %s1535_s11 = scalar_select %p48_p9, %s1357_s29, %s50_s13  }
  0x25   : > { %s246_s7 = sadd.s32 %s1369_s8, %s870_s5  ;;  %s241_s3 = scalar_lea.vmem [#allocation3], %s869_s6 }
  0x26   : > { %s871_s4 = sshll.u32 %s246_s7, 7  ;;  %s249_s2 = sshll.u32 %s241_s3, 4  ;;  %s1544_s2 = int_to_ptr.vmem [resolvable:$true] %s249_s2 }
  0x27   : > { %s1908_s0 = sld [smem:[#allocation20_spill]]  ;;  %p1550_p10 = pnand %p1887_p7, %p1516_p3 }
  0x28   : > { %p875_p11 = scmp.ge.s32.totalorder %s1377_s10, 1  ;;  %s1555_s3 = scalar_lea.sflag [#allocation4], %s237_s18 }
  0x29   : > { %p1137_p13 = pneg %p1550_p10 }
  0x2d   : > { %s1542_s21 = scalar_lea.hbm %s1908_s0, %s871_s4  ;;  %s1140_s6 = scalar_lea.hbm %s1908_s0, 1024 }
  0x2e   : > { %s1135_s1 = scalar_lea.hbm %s1542_s21, 256  ;;  %p1141_p3 = scmp.lt.u32.totalorder %s1542_s21, %s1908_s0 }
  0x2f   : > { %p1136_p12 = scmp.ne.s32.totalorder %s1542_s21, %s1135_s1  ;;  %p1142_p4 = scmp.lt.u32.totalorder %s1140_s6, %s1135_s1 }
  0x30   : > { %p1144_p9 = scmp.lt.u32.totalorder %s1135_s1, %s1542_s21 }
  0x31   : > { %p1138_p0 = pnand %p1137_p13, %p1136_p12  ;;  %p1143_p8 = por %p1142_p4, %p1141_p3 }
  0x33   : > { %p1139_p1 = pneg %p1138_p0  ;;  %p1145_p7 = por %p1144_p9, %p1143_p8 }
  0x35   : > { %p1146_p2 = pnand %p1145_p7, %p1139_p1 }
  0x37   : > { %1149 = shalt.err (!%p1146_p2)
}
  0x38   : > { %s1150_s15 = scalar_lea.vmem %s1544_s2, 256  ;;  %s1379_s16 = smov [#allocation3]  }
  0x39   : > { %p1151_p12 = scmp.ne.s32.totalorder %s1544_s2, %s1150_s15  ;;  %s1155_s17 = sshll.u32 %s1379_s16, 4  ;;  %s1156_s17 = int_to_ptr.vmem [resolvable:$false] %s1155_s17 }
  0x3a   : > { %s1157_s18 = scalar_lea.vmem %s1156_s17, 512  ;;  %p1158_p6 = scmp.lt.s32.totalorder %s1544_s2, %s1156_s17 }
  0x3b   : > { %p1153_p0 = pnand %p1151_p12, %p1137_p13  ;;  %p1159_p3 = scmp.lt.s32.totalorder %s1157_s18, %s1150_s15 }
  0x3d   : > { %p1154_p5 = pneg %p1153_p0  ;;  %p1160_p4 = por %p1159_p3, %p1158_p6 }
  0x3f   : > { %p1161_p8 = pnand %p1160_p4, %p1154_p5 }
  0x41   : > { %1164 = shalt.err (!%p1161_p8)
}
  0x42   : > { %s1380_s19 = smov 256   ;;  %s1381_s1 = smov 128  }
  0x43   : > { %s1382_s4 = smov 8   ;;  %s1910_s5 = sld [smem:[#allocation15_spill]] }
  0x44   : > { %984 = dma.hbm_to_vmem [thread:$0]  (!%p1550_p10), %s1542_s21, 256, %s1544_s2, %s1555_s3, %s1380_s19, %s1381_s1, %s1382_s4  }
  0x45   : > { %p278_p2 = scmp.lt.s32.totalorder %s1377_s10, 5  ;;  %s865_s30 = sadd.s32 4294967295, %s1377_s10  }
  0x46   : > { %s866_s7 = sadd.s32 4294967294, %s1377_s10   ;;  %p64_p6 = scmp.eq.s32.totalorder %s865_s30, 0 }
  0x47   : > { %p1586_p5 = pnand %p875_p11, %p278_p2  ;;  %s76_s15 = sadd.s32 1, %s1345_s26 }
  0x48   : > { %p1912_p7 = scmp.eq.s32.totalorder %s1512_s14, 0  ;;  %p1913_p13 = scmp.ne.s32.totalorder %s1353_s28, %s1349_s27 }
  0x49   : > { %p83_p10 = scmp.ne.s32.totalorder %s1345_s26, %s1341_s25  ;;  %p89_p11 = scmp.ne.s32.totalorder %s1341_s25, %s1337_s24 }
  0x4a   : > { %s1596_s16 = scalar_select %p1912_p7, %s1345_s26, %s76_s15  }
  0x4b   : > { %p1601_p1 = por %p64_p6, %p1913_p13  ;;  %p175_p9 = scmp.ne.s32.totalorder %s1333_s23, %s1329_s22 }
  0x4c   : > { %p1915_p12 = scmp.eq.s32.totalorder %s1377_s10, 0  ;;  %p176_p3 = scmp.eq.s32.totalorder %s865_s30, 3 }
  0x4d   : > { %s1914_s13 = scalar_select %p1601_p1, 1, 0 }
  0x4e   : > { %p85_p0 = por %p83_p10, %p1915_p12  ;;  %p1613_p4 = por %p89_p11, %p64_p6 }
  0x4f   : > { %p181_p8 = scmp.ne.s32.totalorder %s1329_s22, %s1910_s5  ;;  %p1619_p2 = por %p176_p3, %p175_p9 }
  0x50   : > { %s1916_s2 = scalar_select %p1613_p4, 1, 0 }
  0x51   : > { %s1917_s21 = scalar_select %p1619_p2, 1, 0 }
  0x52   : > { %p182_p7 = scmp.eq.s32.totalorder %s866_s7, 3  ;;  %s259_s27 = sand.u32 1, %s1345_s26  }
  0x53   : > { %s915_s14 = sshll.u32 %s1369_s8, 10  ;;  %s872_s24 = sshll.u32 %s259_s27, 6 }
  0x54   : > { %p1625_p13 = por %p182_p7, %p181_p8  ;;  %s1919_s19 = sld [smem:[#allocation21_spill]] }
  0x55   : > { %p1920_p6 = scmp.lt.s32.totalorder %s1377_s10, 4  ;;  %s263_s5 = scalar_lea.vmem [#allocation6], %s872_s24 }
  0x56   : > { %s1918_s3 = scalar_select %p1625_p13, 1, 0 }
  0x57   : > { %p1636_p10 = pnand %p1920_p6, %p85_p0  ;;  %s270_s30 = sshll.u32 %s263_s5, 4  ;;  %s1640_s30 = int_to_ptr.vmem [resolvable:$true] %s270_s30 }
  0x58   : > { %s1642_s7 = scalar_lea.sflag [#allocation7], %s259_s27 }
  0x59   : > { %p1167_p9 = pneg %p1636_p10 }
  0x5a   : > { %s1632_s1 = scalar_lea.hbm %s1919_s19, %s915_s14  ;;  %s1170_s18 = scalar_lea.hbm %s1919_s19, 2048 }
  0x5b   : > { %s1165_s15 = scalar_lea.hbm %s1632_s1, 1024  ;;  %p1171_p0 = scmp.lt.u32.totalorder %s1632_s1, %s1919_s19 }
  0x5c   : > { %p1166_p11 = scmp.ne.s32.totalorder %s1632_s1, %s1165_s15  ;;  %p1172_p8 = scmp.lt.u32.totalorder %s1170_s18, %s1165_s15 }
  0x5d   : > { %p1174_p6 = scmp.lt.u32.totalorder %s1165_s15, %s1632_s1 }
  0x5e   : > { %p1168_p12 = pnand %p1167_p9, %p1166_p11  ;;  %p1173_p7 = por %p1172_p8, %p1171_p0 }
  0x60   : > { %p1169_p3 = pneg %p1168_p12  ;;  %p1175_p13 = por %p1174_p6, %p1173_p7 }
  0x62   : > { %p1176_p2 = pnand %p1175_p13, %p1169_p3 }
  0x64   : > { %1179 = shalt.err (!%p1176_p2)
}
  0x65   : > { %s1180_s27 = scalar_lea.vmem %s1640_s30, 1024  ;;  %s1383_s24 = smov [#allocation6]  }
  0x66   : > { %p1181_p11 = scmp.ne.s32.totalorder %s1640_s30, %s1180_s27  ;;  %s1185_s5 = sshll.u32 %s1383_s24, 4  ;;  %s1186_s5 = int_to_ptr.vmem [resolvable:$false] %s1185_s5 }
  0x67   : > { %s1187_s0 = scalar_lea.vmem %s1186_s5, 2048  ;;  %p1188_p1 = scmp.lt.s32.totalorder %s1640_s30, %s1186_s5 }
  0x68   : > { %p1183_p12 = pnand %p1181_p11, %p1167_p9  ;;  %p1189_p0 = scmp.lt.s32.totalorder %s1187_s0, %s1180_s27 }
  0x6a   : > { %p1184_p4 = pneg %p1183_p12  ;;  %p1190_p8 = por %p1189_p0, %p1188_p1 }
  0x6c   : > { %p1191_p7 = pnand %p1190_p8, %p1184_p4 }
  0x6e   : > { %1194 = shalt.err (!%p1191_p7)
}
  0x6f   : > { %s1384_s12 = smov 64   ;;  %s1385_s15 = smov 4  }
  0x70   : > { %987 = dma.hbm_to_vmem [thread:$0]  (!%p1636_p10), %s1632_s1, 1024, %s1640_s30, %s1642_s7, %s1384_s12, %s1384_s12, %s1385_s15  }
  0x71   : > { %282 = sbr.rel (%p1586_p5) target bundleno = 901 (0x385), region = 40  ;;  %s284_s14 = sand.u32 (!%p1586_p5), 1, %s1353_s28  }
  0x72   : > { %s1673_s17 = sshll.u32 (!%p1586_p5), %s284_s14, 4  ;;  %s285_s18 = scalar_lea.sflag (!%p1586_p5), [#allocation4], %s284_s14 }
  0x73   : > { %s288_s27 = scalar_lea.vmem (!%p1586_p5), [#allocation3], %s1673_s17  ;;  %p1922_p1 = scmp.ne.s32.totalorder (!%p1586_p5), %s1914_s13, 0 }
  0x78   : > { %1308 = dma.done.wait (%p1922_p1), %s285_s18, 256  }
  0x79   : > { %1310 = vsyncadd (%p1922_p1), %s285_s18, 4294967040  ;;  %s293_s4 = sand.u32 1, %s1341_s25   ;;  %p1923_p5 = scmp.ne.s32.totalorder %s1916_s2, 0 }
  0x7a   : > { %s877_s1 = sshll.u32 %s293_s4, 6  ;;  %s294_s30 = scalar_lea.sflag [#allocation7], %s293_s4 }
  0x7b   : > { %s1681_s6 = scalar_lea.vmem [#allocation6], %s877_s1 }
  0x7c   : > { %1312 = dma.done.wait (%p1923_p5), %s294_s30, 1024  }
  0x7d   : > { %1314 = vsyncadd (%p1923_p5), %s294_s30, 4294966272  ;;  %s1688_s7 = sand.u32 1, %s1329_s22   ;;  %s1924_s12 = sld [smem:[#allocation16_spill]] }
  0x7e   : > { %s878_s24 = sshll.u32 %s1688_s7, 2  ;;  %s879_s13 = sshll.u32 %s1688_s7, 3 }
  0x7f   : > { %s1692_s5 = scalar_lea.vmem [#allocation8], %s878_s24  ;;  %s1694_s0 = scalar_lea.vmem [#allocation9], %s879_s13 }
  0x83   : > { %p880_p4 = scmp.ne.s32.totalorder %s1924_s12, 0 }
  0x84   : > { %v1386_v0 = vmov (!%p880_p4), 0.0  }
  0x85   : > { %341 = sbr.rel (%p880_p4) target bundleno = 140 (0x8c), region = 52  ;;  %342 = vst [vmem:[#allocation2] sm:$0xff] (!%p880_p4), %v1386_v0  ;;  %343 = vst [vmem:[#allocation2 + $0x8] sm:$0xff] (!%p880_p4), %v1386_v0 }
  0x8c PF: > { %v1122_v1 = vld [vmem:[%s1681_s6] sm:$0xff]   ;;  %v1387_v2 = vmov 0.0   ;;  %v1123_v3 = vld [vmem:[%s1681_s6 + $0x8] sm:$0xff]   ;;  %vm1388_vm0 = vmmov 0   ;;  %v1124_v4 = vld [vmem:[%s1681_s6 + $0x10] sm:$0xff]   ;;  %s1925_s2 = sld [smem:[#allocation16_spill]] }
  0x8d   : > { %939 = vmatprep.subr.bf16.mxu0 %v1387_v2  ;;  %955 = vmatprep.mubr.msk.bf16.mxu0 %vm1388_vm0, %v1387_v2  ;;  %v1125_v5 = vld [vmem:[%s1681_s6 + $0x18] sm:$0xff]   ;;  %v1126_v6 = vld [vmem:[%s1681_s6 + $0x20] sm:$0xff]   ;;  %v1127_v7 = vld [vmem:[%s1681_s6 + $0x28] sm:$0xff]  }
  0x8e   : > { %940 = vmatpush3.bf16.msra.mxu0 %v1122_v1  ;;  %v1128_v8 = vld [vmem:[%s1681_s6 + $0x30] sm:$0xff]   ;;  %v1129_v9 = vld [vmem:[%s1681_s6 + $0x38] sm:$0xff]  }
  0x8f   : > { %941 = vmatprep.subr.bf16.mxu0 %v1387_v2  ;;  %v344_v10 = vld [vmem:[%s288_s27] sm:$0xff]  ;;  %v345_v11 = vld [vmem:[%s288_s27 + $0x8] sm:$0xff] }
  0x90   : > { %v346_v12 = vpack.c.bf16 %v345_v11, %v344_v10  ;;  %v347_v13 = vld [vmem:[#allocation2] sm:$0xff]  ;;  %v348_v15 = vld [vmem:[#allocation2 + $0x8] sm:$0xff] }
  0x92   : > { %942 = vmatpush3.bf16.msra.mxu0 %v1123_v3  ;;  %p889_p2 = scmp.ne.s32.totalorder %s1925_s2, 1 }
  0x93   : > { %943 = vmatprep.subr.bf16.mxu0 %v1387_v2  ;;  %vm503_vm1 = vcmask (!%p889_p2), 130048   ;;  %s1926_s17 = sld [smem:[#allocation22_spill]] (!%p889_p2)  ;;  %v1389_v25 = vmov (!%p889_p2), 0   ;;  %s1927_s4 = sld [smem:[#allocation23_spill]] (!%p889_p2)  ;;  %v1390_v31 = vmov (!%p889_p2), 0.0   ;;  %vm1391_vm2 = vmmov (!%p889_p2), 0  }
  0x94   : > { %1130 = vset.pattern.permute.xlu0 (!%p889_p2), %v1389_v25  ;;  %1131 = vset.pattern.permute.xlu1 (!%p889_p2), %v1389_v25  ;;  %v568_v32 = vlaneseq (!%p889_p2)  ;;  %s1934_s27 = sld [smem:[#allocation24_spill]] (!%p889_p2) }
  0x95   : > { %965 = vmatprep.subr.bf16.mxu1 (!%p889_p2), %v1390_v31  ;;  %969 = vmatprep.mubr.msk.bf16.mxu1 (!%p889_p2), %vm1391_vm2, %v1390_v31 }
  0x96   : > { %944 = vmatpush3.bf16.msra.mxu0 %v1124_v4  ;;  %v569_v33 = vand.u32 (!%p889_p2), 127, %v568_v32 }
  0x97   : > { %945 = vmatprep.subr.bf16.mxu0 %v1387_v2 }
  0x98   : > { %vm578_vm3 = vcmp.ge.s32.totalorder (!%p889_p2), %v569_v33, 1  ;;  %vm592_vm4 = vcmp.ge.s32.totalorder (!%p889_p2), %v569_v33, 5  ;;  %vm607_vm5 = vcmp.ge.s32.totalorder (!%p889_p2), %v569_v33, 14  ;;  %vm614_vm7 = vcmp.lt.s32.totalorder (!%p889_p2), %v569_v33, 50 }
  0x99   : > { %v1132_v24 = vld [vmem:[%s1926_s17] sm:$0xff] (!%p889_p2)   ;;  %v1133_v27 = vld [vmem:[%s1926_s17 + $0x8] sm:$0xff] (!%p889_p2)   ;;  %v471_v28 = vld [vmem:[%s1927_s4 + $0x10] sm:$0xff] (!%p889_p2)  ;;  %v579_v34 = vsel (!%p889_p2), %vm578_vm3, 1, %v1389_v25  ;;  %v593_v35 = vsel (!%p889_p2), %vm592_vm4, 1, %v1389_v25  ;;  %v608_v37 = vsel (!%p889_p2), %vm607_vm5, 1, %v1389_v25 }
  0x9a   : > { %946 = vmatpush3.bf16.msra.mxu0 %v1125_v5  ;;  %v469_v26 = vld [vmem:[%s1927_s4] sm:$0xff] (!%p889_p2)  ;;  %485 = vperm.xlu1 (!%p889_p2), %1131, %v471_v28   ;;  %v470_v29 = vld [vmem:[%s1927_s4 + $0x8] sm:$0xff] (!%p889_p2)  ;;  %v472_v30 = vld [vmem:[%s1927_s4 + $0x18] sm:$0xff] (!%p889_p2)  ;;  %v594_v36 = vadd.s32 (!%p889_p2), %v593_v35, %v579_v34 }
  0x9b   : > { %947 = vmatprep.subr.bf16.mxu0 %v1387_v2  ;;  %475 = vperm.xlu0 (!%p889_p2), %1130, %v469_v26   ;;  %v1134_v3 = vld [vmem:[%s1934_s27] sm:$0xff] (!%p889_p2)  }
  0x9c   : > { %v609_v39 = vadd.s32 (!%p889_p2), %v608_v37, %v594_v36 }
  0x9e   : > { %948 = vmatpush3.bf16.msra.mxu0 %v1126_v6  ;;  %490 = vperm.xlu1 (!%p889_p2), %1131, %v472_v30   ;;  %vm896_vm6 = vcmp.eq.s32.totalorder (!%p889_p2), %v609_v39, 2  ;;  %vm894_vm8 = vcmp.eq.s32.totalorder (!%p889_p2), %v609_v39, 0  ;;  %vm897_vm9 = vcmp.eq.s32.totalorder (!%p889_p2), %v609_v39, 3  ;;  %vm895_vm11 = vcmp.eq.s32.totalorder (!%p889_p2), %v609_v39, 1 }
  0x9f   : > { %949 = vmatprep.subr.bf16.mxu0 %v1387_v2  ;;  %480 = vperm.xlu0 (!%p889_p2), %1130, %v470_v29   ;;  %vm1731_vm10 = vmand (!%p889_p2), %vm896_vm6, %vm614_vm7 }
  0xa0   : > { %vm1736_vm12 = vmand (!%p889_p2), %vm894_vm8, %vm614_vm7 }
  0xa1   : > { %vm1741_vm13 = vmand (!%p889_p2), %vm897_vm9, %vm614_vm7 }
  0xa2   : > { %950 = vmatpush3.bf16.msra.mxu0 %v1127_v7  ;;  %vm616_vm14 = vmand (!%p889_p2), %vm895_vm11, %vm614_vm7 }
  0xa3   : > { %951 = vmatprep.subr.bf16.mxu0 %v1387_v2  ;;  %vm899_vm15 = vmpackc.low (!%p889_p2), %vm616_vm14, %vm1736_vm12 }
  0xa4   : > { %vm902_vm0 = vmpackc.low (!%p889_p2), %vm1741_vm13, %vm1731_vm10 }
  0xa6   : > { %952 = vmatpush3.bf16.msra.mxu0 %v1128_v8 }
  0xa7   : > { %953 = vmatprep.subr.bf16.mxu0 %v1387_v2 }
  0xaa   : > { %954 = vmatpush3.bf16.msra.mxu0 %v1129_v9 }
  0xad   : > { %956 = vmatmul.mubr.bf16.vlgmr.msra.gmra.mrb[0].mxu0 %v346_v12 }
  0xae   : > { %961 = vmatprep.mubr.msk.bf16.mxu0 (!%p889_p2), %vm503_vm1, %v1132_v24 }
 0x119   : > { %v486_v38 = vpop.permute.xlu1 (!%p889_p2), %485 }
 0x11a   : > { %v476_v40 = vpop.permute.xlu0 (!%p889_p2), %475 }
 0x11d   : > { %v491_v42 = vpop.permute.xlu1 (!%p889_p2), %490 }
 0x11e   : > { %v481_v49 = vpop.permute.xlu0 (!%p889_p2), %480 }
 0x17f   : > { %461 = sbr.rel (%p889_p2) target bundleno = 848 (0x350), region = 56 }
 0x180   : > { %v447_v14 = vpop.f32.mrb[0].mxu0 }
 0x181   : > { %v454_v16 = vadd.f32 %v447_v14, %v347_v13  ;;  %v957_v17 = vpop.f32.mrb[1].mxu0 }
 0x182   : > { %v450_v18 = vpop.f32.mrb[2].mxu0 }
 0x183   : > { %456 = vst [vmem:[#allocation2] sm:$0xff] %v454_v16  ;;  %v455_v19 = vadd.f32 %v450_v18, %v348_v15  ;;  %v958_v20 = vpop.f32.mrb[3].mxu0 }
 0x185   : > { %457 = vst [vmem:[#allocation2 + $0x8] sm:$0xff] %v455_v19 }
 0x18a   : > { %v462_v21 = vld [vmem:[#allocation2] sm:$0xff] }
 0x18c   : > { %v463_v22 = vld [vmem:[#allocation2 + $0x8] sm:$0xff] }
 0x18d   : > { %v464_v23 = vpack.c.bf16 %v463_v22, %v462_v21 }
 0x18f   : > { %959 = vmatprep.subr.bf16.mxu0 %v464_v23 }
 0x190   : > { %960 = vmatpush3.bf16.msra.mxu0 %v464_v23 }
 0x193   : > { %962 = vmatmul.mubr.msk.bf16.vlgmr.msra.gmra.mrb[0].mxu0 %vm503_vm1, %v1133_v27  ;;  %vm637_vm1 = vcmask 261120  }
 0x266   : > { %v963_v41 = vpop.f32.mrb[0].mxu0 }
 0x267   : > { %v553_v43 = vadd.f32 %v963_v41, %v486_v38  ;;  %v544_v45 = vpop.f32.mrb[1].mxu0 }
 0x268   : > { %v545_v46 = vadd.f32 %v544_v45, %v476_v40  ;;  %v964_v47 = vpop.f32.mrb[2].mxu0 }
 0x269   : > { %v561_v50 = vmax.f32 %v553_v43, 0.0  ;;  %v556_v51 = vadd.f32 %v964_v47, %v491_v42  ;;  %v547_v53 = vpop.f32.mrb[3].mxu0 }
 0x26a   : > { %v559_v54 = vmax.f32 %v545_v46, 0.0  ;;  %v548_v55 = vadd.f32 %v547_v53, %v481_v49 }
 0x26b   : > { %v621_v56 = vsel %vm1731_vm10, %v561_v50, 0.0  ;;  %v562_v57 = vmax.f32 %v556_v51, 0.0 }
 0x26c   : > { %v560_v58 = vmax.f32 %v548_v55, 0.0  ;;  %v619_v59 = vsel %vm1736_vm12, %v559_v54, 0.0 }
 0x26d   : > { %v622_v60 = vsel %vm1741_vm13, %v562_v57, 0.0  ;;  %v903_v61 = vpack.c.bf16 %v562_v57, %v561_v50 }
 0x26e   : > { %v900_v62 = vpack.c.bf16 %v560_v58, %v559_v54  ;;  %v620_v63 = vsel %vm616_vm14, %v560_v58, 0.0 }
 0x26f   : > { %v623_v0 = vadd.f32 %v620_v63, %v619_v59 }
 0x270   : > { %966 = vmatpush3.bf16.msk.msra.mxu1 %vm899_vm15, %v900_v62 }
 0x271   : > { %v624_v1 = vadd.f32 %v623_v0, %v621_v56  ;;  %967 = vmatprep.subr.bf16.mxu1 %v1390_v31 }
 0x273   : > { %v625_v2 = vadd.f32 %v624_v1, %v622_v60 }
 0x274   : > { %968 = vmatpush3.bf16.msk.msra.mxu1 %vm902_vm0, %v903_v61 }
 0x275   : > { %v626_v4 = vpack.c.bf16 %v625_v2, %v625_v2 }
 0x277   : > { %627 = vst [vmem:[%s1692_s5] sm:$0xf] %v626_v4  ;;  %970 = vmatmul.mubr.msk.bf16.vlgmr.msra.gmra.mrb[0].mxu1 %vm637_vm1, %v1134_v3 }
 0x34a   : > { %v675_v5 = vpop.f32.mrb[0].mxu1 }
 0x34b   : > { %v971_v6 = vpop.f32.mrb[1].mxu1 }
 0x34c   : > { %v678_v7 = vpop.f32.mrb[2].mxu1 }
 0x34d   : > { %v922_v8 = vpack.c.bf16 %v678_v7, %v675_v5  ;;  %v972_v9 = vpop.f32.mrb[3].mxu1 }
 0x34f   : > { %923 = vst [vmem:[%s1694_s0] sm:$0xff] %v922_v8  }
 0x350 PF: > { %s1935_s1 = sld [smem:[#allocation17_spill]]  ;;  %s1936_s13 = sld [smem:[#allocation25_spill]] }
 0x351   : > { %s711_s2 = sshll.u32 %s1692_s5, 4  ;;  %s693_s15 = scalar_lea.sflag [#allocation5], %s1688_s7  ;;  %s712_s2 = int_to_ptr.vmem [resolvable:$true] %s711_s2 }
 0x352   : > { %s1195_s14 = scalar_lea.vmem %s712_s2, 64  ;;  %p1937_p10 = scmp.ne.s32.totalorder %s1917_s21, 0 }
 0x353   : > { %p1196_p13 = scmp.ne.s32.totalorder %s712_s2, %s1195_s14  ;;  %s1392_s18 = smov [#allocation8]  }
 0x354   : > { %s1199_s27 = sshll.u32 %s1392_s18, 4  ;;  %s1200_s27 = int_to_ptr.vmem [resolvable:$false] %s1199_s27 }
 0x355   : > { %p1197_p9 = pnand %p1196_p13, %p1937_p10  ;;  %s1201_s4 = scalar_lea.vmem %s1200_s27, 128 }
 0x356   : > { %s910_s30 = sshll.u32 %s1935_s1, 6  ;;  %p1202_p6 = scmp.lt.s32.totalorder %s712_s2, %s1200_s27 }
 0x357   : > { %s1767_s12 = scalar_lea.hbm %s1936_s13, %s910_s30  ;;  %p1198_p3 = pneg %p1197_p9 }
 0x358   : > { %p1203_p11 = scmp.lt.s32.totalorder %s1201_s4, %s1195_s14 }
 0x35a   : > { %p1204_p12 = por %p1203_p11, %p1202_p6 }
 0x35c   : > { %p1205_p0 = pnand %p1204_p12, %p1198_p3 }
 0x35e   : > { %1208 = shalt.err (!%p1205_p0)
}
 0x35f   : > { %s1209_s5 = scalar_lea.hbm %s1767_s12, 64  ;;  %s1213_s24 = scalar_lea.hbm %s1936_s13, 128 }
 0x360   : > { %p1210_p8 = scmp.ne.s32.totalorder %s1767_s12, %s1209_s5  ;;  %p1214_p5 = scmp.lt.u32.totalorder %s1767_s12, %s1936_s13 }
 0x361   : > { %p1215_p4 = scmp.lt.u32.totalorder %s1213_s24, %s1209_s5  ;;  %p1217_p13 = scmp.lt.u32.totalorder %s1209_s5, %s1767_s12 }
 0x362   : > { %p1211_p7 = pnand %p1210_p8, %p1937_p10 }
 0x363   : > { %p1216_p2 = por %p1215_p4, %p1214_p5 }
 0x364   : > { %p1212_p1 = pneg %p1211_p7 }
 0x365   : > { %p1218_p9 = por %p1217_p13, %p1216_p2 }
 0x367   : > { %p1219_p3 = pnand %p1218_p9, %p1212_p1 }
 0x369   : > { %1222 = shalt.err (!%p1219_p3)
}
 0x36a   : > { %977 = dma.vmem_to_hbm [thread:$0]  (%p1937_p10), %s712_s2, 64, %s1767_s12, %s693_s15  }
 0x36b   : > { %s918_s4 = sshll.u32 %s1935_s1, 7  ;;  %s724_s14 = sshll.u32 %s1694_s0, 4  ;;  %s1795_s14 = int_to_ptr.vmem [resolvable:$true] %s724_s14 }
 0x36c   : > { %s1938_s18 = sld [smem:[#allocation26_spill]]  ;;  %s698_s5 = scalar_lea.sflag [#allocation10], %s1688_s7 }
 0x36d   : > { %s1223_s24 = scalar_lea.vmem %s1795_s14, 128  ;;  %s1393_s13 = smov [#allocation9]  }
 0x36e   : > { %p1224_p6 = scmp.ne.s32.totalorder %s1795_s14, %s1223_s24  ;;  %s1227_s12 = sshll.u32 %s1393_s13, 4  ;;  %s1228_s12 = int_to_ptr.vmem [resolvable:$false] %s1227_s12 }
 0x36f   : > { %s1229_s0 = scalar_lea.vmem %s1228_s12, 256  ;;  %p1230_p0 = scmp.lt.s32.totalorder %s1795_s14, %s1228_s12 }
 0x370   : > { %p1225_p11 = pnand %p1224_p6, %p1937_p10  ;;  %p1231_p8 = scmp.lt.s32.totalorder %s1229_s0, %s1223_s24 }
 0x372   : > { %s1793_s27 = scalar_lea.hbm %s1938_s18, %s918_s4  ;;  %p1226_p12 = pneg %p1225_p11 }
 0x373   : > { %p1232_p7 = por %p1231_p8, %p1230_p0 }
 0x375   : > { %p1233_p1 = pnand %p1232_p7, %p1226_p12 }
 0x377   : > { %1236 = shalt.err (!%p1233_p1)
}
 0x378   : > { %s1237_s1 = scalar_lea.hbm %s1793_s27, 128  ;;  %s1241_s13 = scalar_lea.hbm %s1938_s18, 256 }
 0x379   : > { %p1238_p5 = scmp.ne.s32.totalorder %s1793_s27, %s1237_s1  ;;  %p1242_p13 = scmp.lt.u32.totalorder %s1793_s27, %s1938_s18 }
 0x37a   : > { %p1243_p9 = scmp.lt.u32.totalorder %s1241_s13, %s1237_s1  ;;  %p1245_p6 = scmp.lt.u32.totalorder %s1237_s1, %s1793_s27 }
 0x37b   : > { %p1239_p4 = pnand %p1238_p5, %p1937_p10 }
 0x37c   : > { %p1244_p3 = por %p1243_p9, %p1242_p13 }
 0x37d   : > { %p1240_p2 = pneg %p1239_p4 }
 0x37e   : > { %p1246_p11 = por %p1245_p6, %p1244_p3 }
 0x380   : > { %p1247_p12 = pnand %p1246_p11, %p1240_p2 }
 0x382   : > { %1250 = shalt.err (!%p1247_p12)
}
 0x383   : > { %s1394_s6 = smov 64   ;;  %s1395_s24 = smov 4  }
 0x384   : > { %978 = dma.vmem_to_hbm [thread:$0]  (%p1937_p10), %s1795_s14, 128, %s1793_s27, %s698_s5, %s1394_s6, %s1394_s6, %s1395_s24  }
 0x385 PF: > { %s1939_s12 = sld [smem:[#allocation15_spill]]  ;;  %p996_p0 = scmp.ge.s32.totalorder %s1377_s10, 2 }
 0x386   : > { %p1940_p8 = scmp.ne.s32.totalorder %s1918_s3, 0 }
 0x388   : > { %p989_p7 = pnand %p996_p0, %p1940_p8 }
 0x38b   : > { %s739_s0 = sand.u32 1, %s1939_s12  }
 0x38c   : > { %s740_s1 = scalar_lea.sflag [#allocation5], %s739_s0 }
 0x38d   : > { %1316 = dma.done.wait (!%p989_p7), %s740_s1, 64  }
 0x38e   : > { %1318 = vsyncadd (!%p989_p7), %s740_s1, 4294967232  ;;  %s749_s2 = scalar_lea.sflag [#allocation10], %s739_s0 }
 0x38f   : > { %1320 = dma.done.wait (!%p989_p7), %s749_s2, 128  }
 0x390   : > { %1322 = vsyncadd (!%p989_p7), %s749_s2, 4294967168  ;;  %s29_s10 = sadd.s32 1, %s1377_s10   ;;  %s1942_s3 = sld [smem:[#allocation18_spill]] }
 0x391   : > { %p1826_p1 = scmp.ge.s32.totalorder %s29_s10, 6   ;;  %s1943_s14 = sld [smem:[#allocation19_spill]] }
 0x392   : > { %s1945_s21 = smov %s1329_s22  ;;  %s1946_s22 = smov %s1333_s23 }
 0x393   : > { %s1947_s23 = smov %s1532_s20  ;;  %s1948_s24 = smov %s1341_s25 }
 0x394   : > { %s1949_s25 = smov %s1345_s26  ;;  %s1950_s26 = smov %s1596_s16 }
 0x395   : > { %s1951_s27 = smov %s1353_s28  ;;  %s1952_s28 = smov %s1357_s29 }
 0x396   : > { %s1953_s29 = smov %s1535_s11  ;;  %s1954_s30 = smov %s1369_s8 }
 0x397   : > { %s1955_s7 = smov %s1373_s9  ;;  %s1956_s8 = smov %s1942_s3 }
 0x398   : > { %s1957_s9 = smov %s1943_s14  ;;  %28 = sbr.rel (!%p1826_p1) target bundleno = 22 (0x16), region = 123 }
 0x39f   :  { %754 = vsyncpa [#allocation4], 1 }
 0x3a0   :  { %756 = vsyncpa [#allocation4 + $0x1], 1 }
 0x3a1   :  { %757 = vsyncpa [#allocation7], 1 }
 0x3a2   :  { %759 = vsyncpa [#allocation7 + $0x1], 1 }
 0x3a3   :  { %760 = vsyncpa [#allocation5], 1 }
 0x3a4   :  { %762 = vsyncpa [#allocation5 + $0x1], 1 }
 0x3a5   :  { %763 = vsyncpa [#allocation10], 1 }
 0x3a6   :  { %765 = vsyncpa [#allocation10 + $0x1], 1 }

</bundles_post_ra>
